<compile_context>
chip_gen: v7x
topology: tpu7x:2x2x1
jax: 0.10.0
libtpu: 0.0.40
codegen_flags: <defaults>
</compile_context>

<pallas_src>
import jax
import jax.numpy as jnp
from jax import lax
from jax.experimental import pallas as pl
from jax.experimental.pallas import tpu as pltpu


def _round_up(n, m):
    return ((n + m - 1) // m) * m


def _mlp_kernel(x_ref, w0_ref, b0_ref, w1_ref, b1_ref, w2_ref, b2_ref,
                w3_ref, b3_ref, out_ref):
    # Cast the f32 input tile to bf16 on the VPU (hidden under layer-0 MXU
    # work); every matmul accumulates in f32.
    x = x_ref[...].astype(jnp.bfloat16)
    # Layer 0: (TB, D) @ (D, 512) + bias, ReLU
    h = jnp.dot(x, w0_ref[...], preferred_element_type=jnp.float32)
    h = jnp.maximum(h + b0_ref[...], 0.0)
    # Layer 1: (TB, 512) @ (512, 256)
    h = jnp.dot(h.astype(jnp.bfloat16), w1_ref[...],
                preferred_element_type=jnp.float32)
    h = jnp.maximum(h + b1_ref[...], 0.0)
    # Layer 2: (TB, 256) @ (256, 64)
    h = jnp.dot(h.astype(jnp.bfloat16), w2_ref[...],
                preferred_element_type=jnp.float32)
    h = jnp.maximum(h + b2_ref[...], 0.0)
    # Layer 3: contract h's last axis (64) with the (1, 64) weight row so the
    # result is a lane-dense (1, TB) row -> unmasked full-lane output stores.
    row = lax.dot_general(w3_ref[...], h,
                          dimension_numbers=(((1,), (1,)), ((), ())),
                          preferred_element_type=jnp.float32)
    out_ref[...] = (row + b3_ref[...]).reshape(out_ref.shape)


def _choose_tile(B, tile_b):
    """Pick the batch tile.

    Multiple of 8 (f32 sublanes for the x block), preferably a multiple of 128
    so the lane-dense output row is fully unmasked, and at least 2 tiles when
    B allows so v7x's second TensorCore gets work.  With a cdiv grid the
    ragged-tile waste is at most one tile.
    """
    if B <= 8:
        return B                      # single block == full array: always legal
    if B >= 2 * tile_b:
        return tile_b
    half = -(-B // 2)                 # split into (at least) two tiles
    g = 128 if half >= 128 else 8
    return min(tile_b, _round_up(half, g))


def _vmem_limit_bytes(tb, D):
    """Right-size scoped VMEM: double-buffered x tile + resident params
    (2 bufs each, Pallas default) + live f32 intermediates + out row,
    with 2x headroom for compiler-internal scratch."""
    params_bytes = ((D * 512 + 512 * 256 + 256 * 64) * 2   # bf16 weights
                    + (512 + 256 + 64) * 4                 # f32 biases
                    + (64 + 1) * 4)                        # f32 w3 row + b3
    need = (2 * tb * D * 4                  # x tile (f32), double buffered
            + 2 * params_bytes              # resident params, 2 bufs each
            + tb * (512 + 512 + 256 + 64) * 4   # f32/bf16 intermediates
            + 2 * tb * 4)                   # out row, double buffered
    return int(min(64 * 1024 * 1024, max(16 * 1024 * 1024, 2 * need)))


def baseline_nn_forward(x, kparams, tile_b=512):
    """x: (B, ...) flattened to (B, D). kparams from prepare_params(). Returns (B,)."""
    B = x.shape[0]
    x2d = x.reshape(B, -1)
    if not jnp.issubdtype(x2d.dtype, jnp.floating):
        x2d = x2d.astype(jnp.float32)
    D = x2d.shape[1]
    w0, b0, w1, b1, w2, b2, w3r, b3 = kparams

    tb = _choose_tile(B, tile_b)
    num_tiles = pl.cdiv(B, tb)

    def _resident(arr):
        # Full-array block, constant index_map -> stays VMEM-resident across
        # all batch tiles.
        # TODO(synk): add pipeline_mode=pl.Buffered(1) here for very large
        # input_dim so the constant block is not double-buffered (v7x 64 MiB).
        return pl.BlockSpec(arr.shape, lambda i: (0, 0))

    out = pl.pallas_call(
        _mlp_kernel,
        out_shape=jax.ShapeDtypeStruct((num_tiles, 1, tb), jnp.float32),
        grid=(num_tiles,),
        in_specs=[
            pl.BlockSpec((tb, D), lambda i: (i, 0)),     # x: tiled over batch
            _resident(w0), _resident(b0),
            _resident(w1), _resident(b1),
            _resident(w2), _resident(b2),
            _resident(w3r), _resident(b3),
        ],
        out_specs=pl.BlockSpec((1, 1, tb), lambda i: (i, 0, 0)),
        compiler_params=pltpu.CompilerParams(
            dimension_semantics=("parallel",),     # v7x: 2 TCs split batch tiles
            vmem_limit_bytes=_vmem_limit_bytes(tb, D),
        ),
    )(x2d, w0, b0, w1, b1, w2, b2, w3r, b3)

    # Drop padded rows of the ragged last tile and squeeze(-1).
    return out.reshape(-1)[:B]


def init_params(key, input_dim):
    """f32 params mimicking PyTorch nn.Linear default init.

    Weights are (in_features, out_features) (transposed vs torch), biases (1, out).
    """
    dims = [(input_dim, 512), (512, 256), (256, 64), (64, 1)]
    params = []
    for fan_in, fan_out in dims:
        kw, kb, key = jax.random.split(key, 3)
        bound = 1.0 / (fan_in ** 0.5)
        w = jax.random.uniform(kw, (fan_in, fan_out), jnp.float32, -bound, bound)
        b = jax.random.uniform(kb, (1, fan_out), jnp.float32, -bound, bound)
        params += [w, b]
    return tuple(params)


def prepare_params(params):
    """One-time conversion to the kernel's layout/dtypes (do NOT do this per call).

    First three weight matrices -> bf16 (MXU-native); biases stay f32; the final
    (64, 1) weight becomes an f32 (1, 64) row for the row-form last layer.
    """
    w0, b0, w1, b1, w2, b2, w3, b3 = params
    return (w0.astype(jnp.bfloat16), b0,
            w1.astype(jnp.bfloat16), b1,
            w2.astype(jnp.bfloat16), b2,
            w3.reshape(1, -1).astype(jnp.float32), b3)


def _ref_forward(x, params):
    B = x.shape[0]
    h = x.reshape(B, -1).astype(jnp.float32)
    w0, b0, w1, b1, w2, b2, w3, b3 = params
    h = jnp.maximum(h @ w0 + b0, 0.0)
    h = jnp.maximum(h @ w1 + b1, 0.0)
    h = jnp.maximum(h @ w2 + b2, 0.0)
    h = h @ w3 + b3
    return h[:, 0]


if __name__ == "__main__":
    key = jax.random.PRNGKey(0)
    kx, kp = jax.random.split(key)

    # Small example input consistent with the module: NCHW image flattened by
    # x.view(B, -1) -> input_dim = 4*16*16 = 1024.
    x = jax.random.normal(kx, (2, 4, 16, 16), dtype=jnp.float32)
    input_dim = 4 * 16 * 16
    params = init_params(kp, input_dim)
    kparams = prepare_params(params)

    out = baseline_nn_forward(x, kparams)
    out = jax.block_until_ready(out)

    ref = _ref_forward(x, params)
    assert out.shape == (2,), out.shape
    # bf16 inputs/weights with f32 accumulation -> relaxed tolerance vs pure f32.
    assert jnp.allclose(out, ref, atol=2e-2, rtol=2e-2), (out, ref)

    print("KERNEL_OK")
</pallas_src>

<mosaic_0001>
module attributes {stable_mosaic.version = 11 : i64} {
  func.func @_mlp_kernel(%arg0: i32, %arg1: memref<2x1024xf32, #tpu.memory_space<vmem>>, %arg2: memref<1024x512xbf16, #tpu.memory_space<vmem>>, %arg3: memref<1x512xf32, #tpu.memory_space<vmem>>, %arg4: memref<512x256xbf16, #tpu.memory_space<vmem>>, %arg5: memref<1x256xf32, #tpu.memory_space<vmem>>, %arg6: memref<256x64xbf16, #tpu.memory_space<vmem>>, %arg7: memref<1x64xf32, #tpu.memory_space<vmem>>, %arg8: memref<1x64xf32, #tpu.memory_space<vmem>>, %arg9: memref<1x1xf32, #tpu.memory_space<vmem>>, %arg10: memref<1x1x2xf32, #tpu.memory_space<vmem>>) attributes {dimension_semantics = [#tpu.dimension_semantics<parallel>], iteration_bounds = array<i64: 1>, scalar_prefetch = 0 : i64, scratch_operands = 0 : i64, tpu.core_type = #tpu.core_type<tc>, window_params = [{transform_indices = @transform_0, window_bounds = array<i64: 2, 1024>}, {pipeline_mode = #tpu.pipeline_mode<synchronous>, transform_indices = @transform_1, window_bounds = array<i64: 1024, 512>}, {pipeline_mode = #tpu.pipeline_mode<synchronous>, transform_indices = @transform_2, window_bounds = array<i64: 1, 512>}, {pipeline_mode = #tpu.pipeline_mode<synchronous>, transform_indices = @transform_3, window_bounds = array<i64: 512, 256>}, {pipeline_mode = #tpu.pipeline_mode<synchronous>, transform_indices = @transform_4, window_bounds = array<i64: 1, 256>}, {pipeline_mode = #tpu.pipeline_mode<synchronous>, transform_indices = @transform_5, window_bounds = array<i64: 256, 64>}, {pipeline_mode = #tpu.pipeline_mode<synchronous>, transform_indices = @transform_6, window_bounds = array<i64: 1, 64>}, {pipeline_mode = #tpu.pipeline_mode<synchronous>, transform_indices = @transform_7, window_bounds = array<i64: 1, 64>}, {pipeline_mode = #tpu.pipeline_mode<synchronous>, transform_indices = @transform_8, window_bounds = array<i64: 1, 1>}, {transform_indices = @transform_9, window_bounds = array<i64: 1, 1, 2>}]} {
    %c0 = arith.constant 0 : index
    %c0_0 = arith.constant 0 : index
    %0 = vector.load %arg1[%c0, %c0_0] : memref<2x1024xf32, #tpu.memory_space<vmem>>, vector<2x1024xf32>
    %1 = arith.truncf %0 : vector<2x1024xf32> to vector<2x1024xbf16>
    %c0_1 = arith.constant 0 : index
    %c0_2 = arith.constant 0 : index
    %2 = vector.load %arg2[%c0_1, %c0_2] : memref<1024x512xbf16, #tpu.memory_space<vmem>>, vector<1024x512xbf16>
    %cst = arith.constant dense<0.000000e+00> : vector<2x512xf32>
    %3 = tpu.matmul %1, %2, %cst {dimension_numbers = #tpu.dot_dimension_numbers<[1], [0], [0], [1], [0, 0, 1, 1], [], []>} : vector<2x1024xbf16>, vector<1024x512xbf16>, vector<2x512xf32> -> vector<2x512xf32>
    %c0_3 = arith.constant 0 : index
    %c0_4 = arith.constant 0 : index
    %4 = vector.load %arg3[%c0_3, %c0_4] : memref<1x512xf32, #tpu.memory_space<vmem>>, vector<1x512xf32>
    %5 = vector.broadcast %4 : vector<1x512xf32> to vector<2x512xf32>
    %6 = arith.addf %3, %5 : vector<2x512xf32>
    %cst_5 = arith.constant 0.000000e+00 : f32
    %7 = vector.broadcast %cst_5 : f32 to vector<2x512xf32>
    %8 = arith.maximumf %6, %7 : vector<2x512xf32>
    %9 = arith.truncf %8 : vector<2x512xf32> to vector<2x512xbf16>
    %c0_6 = arith.constant 0 : index
    %c0_7 = arith.constant 0 : index
    %10 = vector.load %arg4[%c0_6, %c0_7] : memref<512x256xbf16, #tpu.memory_space<vmem>>, vector<512x256xbf16>
    %cst_8 = arith.constant dense<0.000000e+00> : vector<2x256xf32>
    %11 = tpu.matmul %9, %10, %cst_8 {dimension_numbers = #tpu.dot_dimension_numbers<[1], [0], [0], [1], [0, 0, 1, 1], [], []>} : vector<2x512xbf16>, vector<512x256xbf16>, vector<2x256xf32> -> vector<2x256xf32>
    %c0_9 = arith.constant 0 : index
    %c0_10 = arith.constant 0 : index
    %12 = vector.load %arg5[%c0_9, %c0_10] : memref<1x256xf32, #tpu.memory_space<vmem>>, vector<1x256xf32>
    %13 = vector.broadcast %12 : vector<1x256xf32> to vector<2x256xf32>
    %14 = arith.addf %11, %13 : vector<2x256xf32>
    %cst_11 = arith.constant 0.000000e+00 : f32
    %15 = vector.broadcast %cst_11 : f32 to vector<2x256xf32>
    %16 = arith.maximumf %14, %15 : vector<2x256xf32>
    %17 = arith.truncf %16 : vector<2x256xf32> to vector<2x256xbf16>
    %c0_12 = arith.constant 0 : index
    %c0_13 = arith.constant 0 : index
    %18 = vector.load %arg6[%c0_12, %c0_13] : memref<256x64xbf16, #tpu.memory_space<vmem>>, vector<256x64xbf16>
    %cst_14 = arith.constant dense<0.000000e+00> : vector<2x64xf32>
    %19 = tpu.matmul %17, %18, %cst_14 {dimension_numbers = #tpu.dot_dimension_numbers<[1], [0], [0], [1], [0, 0, 1, 1], [], []>} : vector<2x256xbf16>, vector<256x64xbf16>, vector<2x64xf32> -> vector<2x64xf32>
    %c0_15 = arith.constant 0 : index
    %c0_16 = arith.constant 0 : index
    %20 = vector.load %arg7[%c0_15, %c0_16] : memref<1x64xf32, #tpu.memory_space<vmem>>, vector<1x64xf32>
    %21 = vector.broadcast %20 : vector<1x64xf32> to vector<2x64xf32>
    %22 = arith.addf %19, %21 : vector<2x64xf32>
    %cst_17 = arith.constant 0.000000e+00 : f32
    %23 = vector.broadcast %cst_17 : f32 to vector<2x64xf32>
    %24 = arith.maximumf %22, %23 : vector<2x64xf32>
    %c0_18 = arith.constant 0 : index
    %c0_19 = arith.constant 0 : index
    %25 = vector.load %arg8[%c0_18, %c0_19] : memref<1x64xf32, #tpu.memory_space<vmem>>, vector<1x64xf32>
    %cst_20 = arith.constant dense<0.000000e+00> : vector<1x2xf32>
    %26 = tpu.matmul %25, %24, %cst_20 {dimension_numbers = #tpu.dot_dimension_numbers<[1], [1], [0], [0], [0, 0, 1, 0], [], []>} : vector<1x64xf32>, vector<2x64xf32>, vector<1x2xf32> -> vector<1x2xf32>
    %c0_21 = arith.constant 0 : index
    %c0_22 = arith.constant 0 : index
    %27 = vector.load %arg9[%c0_21, %c0_22] : memref<1x1xf32, #tpu.memory_space<vmem>>, vector<1x1xf32>
    %28 = vector.broadcast %27 : vector<1x1xf32> to vector<1x2xf32>
    %29 = arith.addf %26, %28 : vector<1x2xf32>
    %30 = vector.shape_cast %29 : vector<1x2xf32> to vector<1x1x2xf32>
    %c0_23 = arith.constant 0 : index
    %c0_24 = arith.constant 0 : index
    %c0_25 = arith.constant 0 : index
    %31 = vector.load %arg10[%c0_23, %c0_24, %c0_25] : memref<1x1x2xf32, #tpu.memory_space<vmem>>, vector<1x1x2xf32>
    tpu.vector_store %arg10[%c0_23, %c0_24, %c0_25], %30 {strides = array<i32>} : memref<1x1x2xf32, #tpu.memory_space<vmem>>, vector<1x1x2xf32>,
    return
  }
  func.func @transform_0(%arg0: i32) -> (i32, i32) {
    %c0_i32 = arith.constant 0 : i32
    %c0_i32_0 = arith.constant 0 : i32
    return %arg0, %c0_i32 : i32, i32
  }
  func.func @transform_1(%arg0: i32) -> (i32, i32) {
    %c0_i32 = arith.constant 0 : i32
    %c0_i32_0 = arith.constant 0 : i32
    %c0_i32_1 = arith.constant 0 : i32
    return %c0_i32, %c0_i32_0 : i32, i32
  }
  func.func @transform_2(%arg0: i32) -> (i32, i32) {
    %c0_i32 = arith.constant 0 : i32
    %c0_i32_0 = arith.constant 0 : i32
    %c0_i32_1 = arith.constant 0 : i32
    return %c0_i32, %c0_i32_0 : i32, i32
  }
  func.func @transform_3(%arg0: i32) -> (i32, i32) {
    %c0_i32 = arith.constant 0 : i32
    %c0_i32_0 = arith.constant 0 : i32
    %c0_i32_1 = arith.constant 0 : i32
    return %c0_i32, %c0_i32_0 : i32, i32
  }
  func.func @transform_4(%arg0: i32) -> (i32, i32) {
    %c0_i32 = arith.constant 0 : i32
    %c0_i32_0 = arith.constant 0 : i32
    %c0_i32_1 = arith.constant 0 : i32
    return %c0_i32, %c0_i32_0 : i32, i32
  }
  func.func @transform_5(%arg0: i32) -> (i32, i32) {
    %c0_i32 = arith.constant 0 : i32
    %c0_i32_0 = arith.constant 0 : i32
    %c0_i32_1 = arith.constant 0 : i32
    return %c0_i32, %c0_i32_0 : i32, i32
  }
  func.func @transform_6(%arg0: i32) -> (i32, i32) {
    %c0_i32 = arith.constant 0 : i32
    %c0_i32_0 = arith.constant 0 : i32
    %c0_i32_1 = arith.constant 0 : i32
    return %c0_i32, %c0_i32_0 : i32, i32
  }
  func.func @transform_7(%arg0: i32) -> (i32, i32) {
    %c0_i32 = arith.constant 0 : i32
    %c0_i32_0 = arith.constant 0 : i32
    %c0_i32_1 = arith.constant 0 : i32
    return %c0_i32, %c0_i32_0 : i32, i32
  }
  func.func @transform_8(%arg0: i32) -> (i32, i32) {
    %c0_i32 = arith.constant 0 : i32
    %c0_i32_0 = arith.constant 0 : i32
    %c0_i32_1 = arith.constant 0 : i32
    return %c0_i32, %c0_i32_0 : i32, i32
  }
  func.func @transform_9(%arg0: i32) -> (i32, i32, i32) {
    %c0_i32 = arith.constant 0 : i32
    %c0_i32_0 = arith.constant 0 : i32
    %c0_i32_1 = arith.constant 0 : i32
    return %arg0, %c0_i32, %c0_i32_0 : i32, i32, i32
  }
}

</mosaic_0001>

<bundles_post_ra>
// kernel: tpu_custom_call.1
= control target key start
LH: loop header
LB: loop body
LE: loop exit
PB: predicated region body
PF: predicated region fallthrough
CT: control target
= control target key end

     0   :  { %s3997_s0 = inlined_call_operand.vmem [shape: f32[2,1024], index: 0, kind: input, shape index: {}]   ;;  %s3998_s1 = inlined_call_operand.hbm [shape: bf16[1024,512], index: 1, kind: input, shape index: {}]   ;;  %s3999_s2 = inlined_call_operand.vmem [shape: f32[1,512], index: 2, kind: input, shape index: {}]   ;;  %s4000_s3 = inlined_call_operand.hbm [shape: bf16[512,256], index: 3, kind: input, shape index: {}]   ;;  %s4001_s4 = inlined_call_operand.vmem [shape: f32[1,256], index: 4, kind: input, shape index: {}]   ;;  %s4002_s5 = inlined_call_operand.vmem [shape: bf16[256,64], index: 5, kind: input, shape index: {}]   ;;  %s4003_s6 = inlined_call_operand.vmem [shape: f32[1,64], index: 6, kind: input, shape index: {}]   ;;  %s4004_s7 = inlined_call_operand.vmem [shape: f32[1,64], index: 7, kind: input, shape index: {}]   ;;  %s4005_s8 = inlined_call_operand.<no memory space> [shape: f32[1,1], index: 8, kind: input, shape index: {}]   ;;  %s4006_s9 = inlined_call_operand.hbm [shape: f32[1,1,2], index: 9, kind: output, shape index: {}]  }
   0x1   :  { %v14_v0 = vstv %s4005_s8 }
   0x2   :  { %15 = vst [vmem:[#allocation2] sm:$0x1] %v14_v0 }
   0x3   :  { %16 = vsyncpa [#allocation4], 0 }
   0x4   :  { %17 = vsyncpa [#allocation7], 0 }
   0x5   :  { %18 = vsyncpa [#allocation5], 0  ;;  %s3758_s11 = smov [#allocation3]   ;;  %s3686_s15 = scalar_lea.hbm %s3998_s1, 32768 }
   0x6   :  { %s26_s12 = sshll.u32 %s3758_s11, 4  ;;  %p3687_p0 = scmp.ne.s32.totalorder %s3998_s1, %s3686_s15  ;;  %s27_s12 = int_to_ptr.vmem [resolvable:$true] %s26_s12 }
   0x7   :  { %p3690_p1 = scmp.lt.u32.totalorder %s3686_s15, %s3998_s1 }
   0x9   :  { %p3692_p2 = pnand %p3690_p1, %p3687_p0 }
   0xb   :  { %3695 = shalt.err (!%p3692_p2)
}
   0xc   :  { %s3696_s8 = scalar_lea.vmem %s27_s12, 32768  ;;  %p3701_p4 = scmp.lt.s32.totalorder %s27_s12, %s27_s12 }
   0xd   :  { %p3697_p3 = scmp.ne.s32.totalorder %s27_s12, %s3696_s8  ;;  %p3702_p5 = scmp.lt.s32.totalorder %s3696_s8, %s3696_s8 }
   0xf   :  { %p3703_p6 = por %p3702_p5, %p3701_p4 }
  0x11   :  { %p3704_p7 = pnand %p3703_p6, %p3697_p3 }
  0x13   :  { %3707 = shalt.err (!%p3704_p7)
}
  0x14   :  { %s3759_s20 = smov 256   ;;  %s3760_s21 = smov 16  }
  0x15   :  { %32 = dma.hbm_to_vmem [thread:$0]  %s3998_s1, 32768, %s27_s12, [#allocation4], %s3759_s20, %s3759_s20, %s3760_s21  }
  0x16   :  { %s3761_s24 = smov [#allocation6]   ;;  %s3708_s28 = scalar_lea.hbm %s4000_s3, 8192 }
  0x17   :  { %s40_s25 = sshll.u32 %s3761_s24, 4  ;;  %p3709_p8 = scmp.ne.s32.totalorder %s4000_s3, %s3708_s28  ;;  %s41_s25 = int_to_ptr.vmem [resolvable:$true] %s40_s25 }
  0x18   :  { %p3712_p9 = scmp.lt.u32.totalorder %s3708_s28, %s4000_s3 }
  0x1a   :  { %p3714_p10 = pnand %p3712_p9, %p3709_p8 }
  0x1c   :  { %3717 = shalt.err (!%p3714_p10)
}
  0x1d   :  { %s3718_s13 = scalar_lea.vmem %s41_s25, 8192  ;;  %p3723_p12 = scmp.lt.s32.totalorder %s41_s25, %s41_s25 }
  0x1e   :  { %p3719_p11 = scmp.ne.s32.totalorder %s41_s25, %s3718_s13  ;;  %p3724_p13 = scmp.lt.s32.totalorder %s3718_s13, %s3718_s13 }
  0x20   :  { %p3725_p0 = por %p3724_p13, %p3723_p12 }
  0x22   :  { %p3726_p1 = pnand %p3725_p0, %p3719_p11 }
  0x24   :  { %3729 = shalt.err (!%p3726_p1)
}
  0x25   :  { %s3762_s1 = smov 128   ;;  %s3763_s12 = smov 8  }
  0x26   :  { %46 = dma.hbm_to_vmem [thread:$0]  %s4000_s3, 8192, %s41_s25, [#allocation7], %s3762_s1, %s3762_s1, %s3763_s12  }
  0x27   :  { %3752 = dma.done.wait [#allocation4], 32768  }
  0x28   :  { %3753 = vsyncadd [#allocation4], 4294934528 }
  0x29   :  { %3754 = dma.done.wait [#allocation7], 8192  }
  0x2a   :  { %3755 = vsyncadd [#allocation7], 4294959104  ;;  %v3188_v1 = vld [vmem:[#allocation3 + $0x4] ss:$16 sps:$4 sm:$0xff]   ;;  %v3192_v3 = vld [vmem:[#allocation3] ss:$16 sps:$4 sm:$0xff]   ;;  %v72_v39 = vlaneseq }
  0x2b   :  { %v3190_v2 = vld [vmem:[#allocation3 + $0x204] ss:$16 sps:$4 sm:$0xff]   ;;  %1676 = vmatprep.subr.bf16.mxu1 %v3188_v1  ;;  %v3193_v4 = vld [vmem:[#allocation3 + $0x200] ss:$16 sps:$4 sm:$0xff]   ;;  %v3764_v37 = vmov 1983009808  }
  0x2c   :  { %1717 = vmatprep.subr.bf16.mxu0 %v3190_v2  ;;  %v3194_v5 = vld [vmem:[#allocation3 + $0x24] ss:$16 sps:$4 sm:$0xff]   ;;  %1677 = vmatpush1.bf16.msra.mxu1 %v3192_v3  ;;  %v3198_v7 = vld [vmem:[#allocation3 + $0x20] ss:$16 sps:$4 sm:$0xff]   ;;  %v70_v38 = vunpack.c.l.s4 %v3764_v37  ;;  %v3846_v44 = vshrl.u32 %v72_v39, 7  ;;  %vm3766_vm0 = vmmov 0  }
  0x2d   :  { %1718 = vmatpush1.bf16.msra.mxu0 %v3193_v4  ;;  %v3196_v6 = vld [vmem:[#allocation3 + $0x224] ss:$16 sps:$4 sm:$0xff]   ;;  %1678 = vmatprep.subr.bf16.mxu1 %v3194_v5  ;;  %v3199_v8 = vld [vmem:[#allocation3 + $0x220] ss:$16 sps:$4 sm:$0xff]   ;;  %vm2681_vm1 = vcmask 523264   ;;  %s3768_s28 = smov [#allocation8]  }
  0x2e   :  { %1719 = vmatprep.subr.bf16.mxu0 %v3196_v6  ;;  %v3200_v9 = vld [vmem:[#allocation3 + $0x44] ss:$16 sps:$4 sm:$0xff]   ;;  %v3204_v11 = vld [vmem:[#allocation3 + $0x40] ss:$16 sps:$4 sm:$0xff]   ;;  %v71_v43 = vunpack.c.0.s8 %v70_v38  ;;  %v3320_v38 = vld [vmem:[#allocation3 + $0xac] ss:$16 sps:$4 sm:$0xff]  }
  0x2f   :  { %v3202_v10 = vld [vmem:[#allocation3 + $0x244] ss:$16 sps:$4 sm:$0xff]   ;;  %v3205_v12 = vld [vmem:[#allocation3 + $0x240] ss:$16 sps:$4 sm:$0xff]   ;;  %s2766_s29 = sshll.u32 %s3768_s28, 4  ;;  %vm2758_vm2 = vcmask 8192   ;;  %s2767_s29 = int_to_ptr.vmem [resolvable:$true] %s2766_s29 }
  0x30   :  { %1679 = vmatpush1.bf16.msra.mxu1 %v3198_v7  ;;  %v3206_v13 = vld [vmem:[#allocation3 + $0x64] ss:$16 sps:$4 sm:$0xff]   ;;  %v3210_v15 = vld [vmem:[#allocation3 + $0x60] ss:$16 sps:$4 sm:$0xff]   ;;  %v3849_v50 = vsub.s32 %v71_v43, %v3846_v44  ;;  %s3734_s30 = scalar_lea.vmem %s2767_s29, 32  ;;  %p3735_p3 = scmp.lt.s32.totalorder %s2767_s29, %s2767_s29 }
  0x31   :  { %1720 = vmatpush1.bf16.msra.mxu0 %v3199_v8  ;;  %1680 = vmatprep.subr.bf16.mxu1 %v3200_v9  ;;  %v3208_v14 = vld [vmem:[#allocation3 + $0x264] ss:$16 sps:$4 sm:$0xff]   ;;  %v3211_v16 = vld [vmem:[#allocation3 + $0x260] ss:$16 sps:$4 sm:$0xff]  }
  0x32   :  { %1721 = vmatprep.subr.bf16.mxu0 %v3202_v10  ;;  %v3212_v17 = vld [vmem:[#allocation3 + $0x84] ss:$16 sps:$4 sm:$0xff]   ;;  %v3216_v19 = vld [vmem:[#allocation3 + $0x80] ss:$16 sps:$4 sm:$0xff]  }
  0x33   :  { %v3214_v18 = vld [vmem:[#allocation3 + $0x284] ss:$16 sps:$4 sm:$0xff]   ;;  %v3217_v20 = vld [vmem:[#allocation3 + $0x280] ss:$16 sps:$4 sm:$0xff]  }
  0x34   :  { %1681 = vmatpush1.bf16.msra.mxu1 %v3204_v11  ;;  %v3218_v21 = vld [vmem:[#allocation3 + $0xa4] ss:$16 sps:$4 sm:$0xff]   ;;  %v3222_v23 = vld [vmem:[#allocation3 + $0xa0] ss:$16 sps:$4 sm:$0xff]  }
  0x35   :  { %1722 = vmatpush1.bf16.msra.mxu0 %v3205_v12  ;;  %1682 = vmatprep.subr.bf16.mxu1 %v3206_v13  ;;  %v3220_v22 = vld [vmem:[#allocation3 + $0x2a4] ss:$16 sps:$4 sm:$0xff]   ;;  %v3223_v24 = vld [vmem:[#allocation3 + $0x2a0] ss:$16 sps:$4 sm:$0xff]  }
  0x36   :  { %1723 = vmatprep.subr.bf16.mxu0 %v3208_v14  ;;  %v3224_v25 = vld [vmem:[#allocation3 + $0xc4] ss:$16 sps:$4 sm:$0xff]   ;;  %v3228_v27 = vld [vmem:[#allocation3 + $0xc0] ss:$16 sps:$4 sm:$0xff]  }
  0x37   :  { %v3226_v26 = vld [vmem:[#allocation3 + $0x2c4] ss:$16 sps:$4 sm:$0xff]   ;;  %v3229_v28 = vld [vmem:[#allocation3 + $0x2c0] ss:$16 sps:$4 sm:$0xff]  }
  0x38   :  { %1683 = vmatpush1.bf16.msra.mxu1 %v3210_v15  ;;  %v3230_v29 = vld [vmem:[#allocation3 + $0xe4] ss:$16 sps:$4 sm:$0xff]   ;;  %v3234_v31 = vld [vmem:[#allocation3 + $0xe0] ss:$16 sps:$4 sm:$0xff]  }
  0x39   :  { %1724 = vmatpush1.bf16.msra.mxu0 %v3211_v16  ;;  %1684 = vmatprep.subr.bf16.mxu1 %v3212_v17  ;;  %v3232_v30 = vld [vmem:[#allocation3 + $0x2e4] ss:$16 sps:$4 sm:$0xff]   ;;  %v3235_v32 = vld [vmem:[#allocation3 + $0x2e0] ss:$16 sps:$4 sm:$0xff]   ;;  %v3290_v16 = vld [vmem:[#allocation3 + $0xc] ss:$16 sps:$4 sm:$0xff]  }
  0x3a   :  { %1725 = vmatprep.subr.bf16.mxu0 %v3214_v18  ;;  %v3236_v33 = vld [vmem:[#allocation3 + $0x104] ss:$16 sps:$4 sm:$0xff]   ;;  %v3240_v35 = vld [vmem:[#allocation3 + $0x100] ss:$16 sps:$4 sm:$0xff]  }
  0x3b   :  { %v3238_v34 = vld [vmem:[#allocation3 + $0x304] ss:$16 sps:$4 sm:$0xff]   ;;  %v3241_v36 = vld [vmem:[#allocation3 + $0x300] ss:$16 sps:$4 sm:$0xff]  }
  0x3c   :  { %1685 = vmatpush1.bf16.msra.mxu1 %v3216_v19  ;;  %v3242_v40 = vld [vmem:[#allocation3 + $0x124] ss:$16 sps:$4 sm:$0xff]   ;;  %v3246_v42 = vld [vmem:[#allocation3 + $0x120] ss:$16 sps:$4 sm:$0xff]  }
  0x3d   :  { %1726 = vmatpush1.bf16.msra.mxu0 %v3217_v20  ;;  %1686 = vmatprep.subr.bf16.mxu1 %v3218_v21  ;;  %v3244_v41 = vld [vmem:[#allocation3 + $0x324] ss:$16 sps:$4 sm:$0xff]   ;;  %v3247_v45 = vld [vmem:[#allocation3 + $0x320] ss:$16 sps:$4 sm:$0xff]   ;;  %v3288_v20 = vld [vmem:[#allocation3 + $0x8] ss:$16 sps:$4 sm:$0xff]  }
  0x3e   :  { %1727 = vmatprep.subr.bf16.mxu0 %v3220_v22  ;;  %v3248_v46 = vld [vmem:[#allocation3 + $0x144] ss:$16 sps:$4 sm:$0xff]   ;;  %v3252_v48 = vld [vmem:[#allocation3 + $0x140] ss:$16 sps:$4 sm:$0xff]   ;;  %v3296_v22 = vld [vmem:[#allocation3 + $0x2c] ss:$16 sps:$4 sm:$0xff]  }
  0x3f   :  { %v3250_v47 = vld [vmem:[#allocation3 + $0x344] ss:$16 sps:$4 sm:$0xff]   ;;  %v3253_v49 = vld [vmem:[#allocation3 + $0x340] ss:$16 sps:$4 sm:$0xff]  }
  0x40   :  { %1687 = vmatpush1.bf16.msra.mxu1 %v3222_v23  ;;  %v3254_v51 = vld [vmem:[#allocation3 + $0x164] ss:$16 sps:$4 sm:$0xff]   ;;  %v3258_v54 = vld [vmem:[#allocation3 + $0x160] ss:$16 sps:$4 sm:$0xff]  }
  0x41   :  { %1728 = vmatpush1.bf16.msra.mxu0 %v3223_v24  ;;  %1688 = vmatprep.subr.bf16.mxu1 %v3224_v25  ;;  %v3256_v52 = vld [vmem:[#allocation3 + $0x364] ss:$16 sps:$4 sm:$0xff]   ;;  %v3259_v57 = vld [vmem:[#allocation3 + $0x360] ss:$16 sps:$4 sm:$0xff]   ;;  %v3294_v24 = vld [vmem:[#allocation3 + $0x28] ss:$16 sps:$4 sm:$0xff]  }
  0x42   :  { %1729 = vmatprep.subr.bf16.mxu0 %v3226_v26  ;;  %v64_v53 = vld [vmem:[%s3997_s0] sm:$0xff]  ;;  %v3868_v43 = vld [vmem:[%s3997_s0 + $0x8] sm:$0xff] }
  0x43   :  { %v75_v55 = vrot.slane %v64_v53, %v3849_v50  ;;  %v68_v56 = vcombine.high %v64_v53, %v64_v53  ;;  %v3260_v58 = vld [vmem:[#allocation3 + $0x184] ss:$16 sps:$4 sm:$0xff]   ;;  %v3264_v62 = vld [vmem:[#allocation3 + $0x180] ss:$16 sps:$4 sm:$0xff]   ;;  %v3302_v26 = vld [vmem:[#allocation3 + $0x4c] ss:$16 sps:$4 sm:$0xff]  }
  0x44   :  { %1689 = vmatpush1.bf16.msra.mxu1 %v3228_v27  ;;  %v3262_v59 = vld [vmem:[#allocation3 + $0x384] ss:$16 sps:$4 sm:$0xff]   ;;  %v3265_v1 = vld [vmem:[#allocation3 + $0x380] ss:$16 sps:$4 sm:$0xff]  }
  0x45   :  { %1730 = vmatpush1.bf16.msra.mxu0 %v3229_v28  ;;  %1690 = vmatprep.subr.bf16.mxu1 %v3230_v29  ;;  %v83_v60 = vcombine.high %v75_v55, %v75_v55  ;;  %v82_v61 = vrot.slane %v68_v56, %v3849_v50  ;;  %v3266_v2 = vld [vmem:[#allocation3 + $0x1a4] ss:$16 sps:$4 sm:$0xff]   ;;  %v3270_v5 = vld [vmem:[#allocation3 + $0x1a0] ss:$16 sps:$4 sm:$0xff]   ;;  %v3859_v17 = vpack.c.bf16 %v75_v55, %v75_v55  ;;  %v3300_v28 = vld [vmem:[#allocation3 + $0x48] ss:$16 sps:$4 sm:$0xff]  }
  0x46   :  { %1731 = vmatprep.subr.bf16.mxu0 %v3232_v30  ;;  %v3268_v3 = vld [vmem:[#allocation3 + $0x3a4] ss:$16 sps:$4 sm:$0xff]   ;;  %v3271_v6 = vld [vmem:[#allocation3 + $0x3a0] ss:$16 sps:$4 sm:$0xff]   ;;  %v3308_v30 = vld [vmem:[#allocation3 + $0x6c] ss:$16 sps:$4 sm:$0xff]  }
  0x47   :  { %v111_v63 = vpack.c.bf16 %v83_v60, %v83_v60  ;;  %v84_v0 = vcombine.high %v82_v61, %v82_v61  ;;  %v3272_v7 = vld [vmem:[#allocation3 + $0x1c4] ss:$16 sps:$4 sm:$0xff]   ;;  %v3276_v9 = vld [vmem:[#allocation3 + $0x1c0] ss:$16 sps:$4 sm:$0xff]   ;;  %v3861_v19 = vpack.c.bf16 %v82_v61, %v82_v61  ;;  %v3338_v56 = vld [vmem:[#allocation3 + $0x10c] ss:$16 sps:$4 sm:$0xff]  }
  0x48   :  { %1691 = vmatpush1.bf16.msra.mxu1 %v3234_v31  ;;  %v3274_v8 = vld [vmem:[#allocation3 + $0x3c4] ss:$16 sps:$4 sm:$0xff]   ;;  %v3277_v10 = vld [vmem:[#allocation3 + $0x3c0] ss:$16 sps:$4 sm:$0xff]   ;;  %v3344_v60 = vld [vmem:[#allocation3 + $0x12c] ss:$16 sps:$4 sm:$0xff]  }
  0x49   :  { %1732 = vmatpush1.bf16.msra.mxu0 %v3235_v32  ;;  %1692 = vmatprep.subr.bf16.mxu1 %v3236_v33  ;;  %v3856_v4 = vpack.c.bf16 %v84_v0, %v84_v0  ;;  %v3278_v11 = vld [vmem:[#allocation3 + $0x1e4] ss:$16 sps:$4 sm:$0xff]   ;;  %v3282_v13 = vld [vmem:[#allocation3 + $0x1e0] ss:$16 sps:$4 sm:$0xff]   ;;  %v3306_v32 = vld [vmem:[#allocation3 + $0x68] ss:$16 sps:$4 sm:$0xff]  }
  0x4a   :  { %1733 = vmatprep.subr.bf16.mxu0 %v3238_v34  ;;  %1708 = vmatprep.mubr.bf16.mxu1 %v111_v63  ;;  %v3280_v12 = vld [vmem:[#allocation3 + $0x3e4] ss:$16 sps:$4 sm:$0xff]   ;;  %v3283_v14 = vld [vmem:[#allocation3 + $0x3e0] ss:$16 sps:$4 sm:$0xff]   ;;  %v3314_v34 = vld [vmem:[#allocation3 + $0x8c] ss:$16 sps:$4 sm:$0xff]  }
  0x4b   :  { %1749 = vmatprep.mubr.bf16.mxu0 %v3856_v4  ;;  %v3287_v15 = vld [vmem:[#allocation3 + $0x404] ss:$16 sps:$4 sm:$0xff]   ;;  %v3285_v18 = vld [vmem:[#allocation3 + $0x400] ss:$16 sps:$4 sm:$0xff]   ;;  %v3350_v0 = vld [vmem:[#allocation3 + $0x14c] ss:$16 sps:$4 sm:$0xff]  }
  0x4c   :  { %1693 = vmatpush1.bf16.msra.mxu1 %v3240_v35  ;;  %v3293_v21 = vld [vmem:[#allocation3 + $0x424] ss:$16 sps:$4 sm:$0xff]   ;;  %v3291_v23 = vld [vmem:[#allocation3 + $0x420] ss:$16 sps:$4 sm:$0xff]  }
  0x4d   :  { %1734 = vmatpush1.bf16.msra.mxu0 %v3241_v36  ;;  %1694 = vmatprep.subr.bf16.mxu1 %v3242_v40  ;;  %v3299_v25 = vld [vmem:[#allocation3 + $0x444] ss:$16 sps:$4 sm:$0xff]   ;;  %v3297_v27 = vld [vmem:[#allocation3 + $0x440] ss:$16 sps:$4 sm:$0xff]   ;;  %v3312_v36 = vld [vmem:[#allocation3 + $0x88] ss:$16 sps:$4 sm:$0xff]  }
  0x4e   :  { %1735 = vmatprep.subr.bf16.mxu0 %v3244_v41  ;;  %v3305_v29 = vld [vmem:[#allocation3 + $0x464] ss:$16 sps:$4 sm:$0xff]   ;;  %v3303_v31 = vld [vmem:[#allocation3 + $0x460] ss:$16 sps:$4 sm:$0xff]   ;;  %v3318_v40 = vld [vmem:[#allocation3 + $0xa8] ss:$16 sps:$4 sm:$0xff]  }
  0x4f   :  { %v3311_v33 = vld [vmem:[#allocation3 + $0x484] ss:$16 sps:$4 sm:$0xff]   ;;  %v3309_v35 = vld [vmem:[#allocation3 + $0x480] ss:$16 sps:$4 sm:$0xff]  }
  0x50   :  { %1695 = vmatpush1.bf16.msra.mxu1 %v3246_v42  ;;  %v3317_v37 = vld [vmem:[#allocation3 + $0x4a4] ss:$16 sps:$4 sm:$0xff]   ;;  %v3315_v39 = vld [vmem:[#allocation3 + $0x4a0] ss:$16 sps:$4 sm:$0xff]   ;;  %v3326_v42 = vld [vmem:[#allocation3 + $0xcc] ss:$16 sps:$4 sm:$0xff]  }
  0x51   :  { %1736 = vmatpush1.bf16.msra.mxu0 %v3247_v45  ;;  %1696 = vmatprep.subr.bf16.mxu1 %v3248_v46  ;;  %v3323_v41 = vld [vmem:[#allocation3 + $0x4c4] ss:$16 sps:$4 sm:$0xff]   ;;  %v3872_v45 = vrot.slane %v3868_v43, %v3849_v50  ;;  %v3321_v46 = vld [vmem:[#allocation3 + $0x4c0] ss:$16 sps:$4 sm:$0xff]  }
  0x52   :  { %1737 = vmatprep.subr.bf16.mxu0 %v3250_v47  ;;  %v3324_v47 = vld [vmem:[#allocation3 + $0xc8] ss:$16 sps:$4 sm:$0xff]   ;;  %v3327_v53 = vld [vmem:[#allocation3 + $0x4e0] ss:$16 sps:$4 sm:$0xff]   ;;  %v3335_v55 = vld [vmem:[#allocation3 + $0x504] ss:$16 sps:$4 sm:$0xff]  }
  0x53   :  { %v3339_v61 = vld [vmem:[#allocation3 + $0x520] ss:$16 sps:$4 sm:$0xff]  }
  0x54   :  { %1697 = vmatpush1.bf16.msra.mxu1 %v3252_v48  ;;  %v100_v48 = vcombine.high %v3872_v45, %v3872_v45 }
  0x55   :  { %1738 = vmatpush1.bf16.msra.mxu0 %v3253_v49  ;;  %1698 = vmatprep.subr.bf16.mxu1 %v3254_v51  ;;  %v3329_v49 = vld [vmem:[#allocation3 + $0x4e4] ss:$16 sps:$4 sm:$0xff]   ;;  %v3332_v51 = vld [vmem:[#allocation3 + $0xec] ss:$16 sps:$4 sm:$0xff]  }
  0x56   :  { %1739 = vmatprep.subr.bf16.mxu0 %v3256_v52  ;;  %v3876_v52 = vpack.c.bf16 %v100_v48, %v100_v48  ;;  %v3405_v48 = vld [vmem:[#allocation3 + $0x680] ss:$16 sps:$4 sm:$0xff]  }
  0x58   :  { %1699 = vmatpush1.bf16.msra.mxu1 %v3258_v54  ;;  %v3330_v54 = vld [vmem:[#allocation3 + $0xe8] ss:$16 sps:$4 sm:$0xff]  }
  0x59   :  { %1740 = vmatpush1.bf16.msra.mxu0 %v3259_v57  ;;  %1700 = vmatprep.subr.bf16.mxu1 %v3260_v58  ;;  %v3333_v57 = vld [vmem:[#allocation3 + $0x500] ss:$16 sps:$4 sm:$0xff]   ;;  %v3336_v58 = vld [vmem:[#allocation3 + $0x108] ss:$16 sps:$4 sm:$0xff]  }
  0x5a   :  { %1741 = vmatprep.subr.bf16.mxu0 %v3262_v59  ;;  %v3341_v59 = vld [vmem:[#allocation3 + $0x524] ss:$16 sps:$4 sm:$0xff]  }
  0x5c   :  { %1701 = vmatpush1.bf16.msra.mxu1 %v3264_v62  ;;  %v3342_v62 = vld [vmem:[#allocation3 + $0x128] ss:$16 sps:$4 sm:$0xff]  }
  0x5d   :  { %1742 = vmatpush1.bf16.msra.mxu0 %v3265_v1  ;;  %1702 = vmatprep.subr.bf16.mxu1 %v3266_v2  ;;  %v3345_v1 = vld [vmem:[#allocation3 + $0x540] ss:$16 sps:$4 sm:$0xff]   ;;  %v3348_v2 = vld [vmem:[#allocation3 + $0x148] ss:$16 sps:$4 sm:$0xff]  }
  0x5e   :  { %1743 = vmatprep.subr.bf16.mxu0 %v3268_v3  ;;  %v3353_v3 = vld [vmem:[#allocation3 + $0x564] ss:$16 sps:$4 sm:$0xff]  }
  0x60   :  { %1703 = vmatpush1.bf16.msra.mxu1 %v3270_v5  ;;  %v3356_v5 = vld [vmem:[#allocation3 + $0x16c] ss:$16 sps:$4 sm:$0xff]  }
  0x61   :  { %1744 = vmatpush1.bf16.msra.mxu0 %v3271_v6  ;;  %1704 = vmatprep.subr.bf16.mxu1 %v3272_v7  ;;  %v3351_v6 = vld [vmem:[#allocation3 + $0x560] ss:$16 sps:$4 sm:$0xff]   ;;  %v3354_v7 = vld [vmem:[#allocation3 + $0x168] ss:$16 sps:$4 sm:$0xff]  }
  0x62   :  { %1745 = vmatprep.subr.bf16.mxu0 %v3274_v8  ;;  %v3359_v8 = vld [vmem:[#allocation3 + $0x584] ss:$16 sps:$4 sm:$0xff]  }
  0x64   :  { %1705 = vmatpush1.bf16.msra.mxu1 %v3276_v9  ;;  %v3362_v9 = vld [vmem:[#allocation3 + $0x18c] ss:$16 sps:$4 sm:$0xff]  }
  0x65   :  { %1746 = vmatpush1.bf16.msra.mxu0 %v3277_v10  ;;  %1706 = vmatprep.subr.bf16.mxu1 %v3278_v11  ;;  %v3357_v10 = vld [vmem:[#allocation3 + $0x580] ss:$16 sps:$4 sm:$0xff]   ;;  %v3360_v11 = vld [vmem:[#allocation3 + $0x188] ss:$16 sps:$4 sm:$0xff]  }
  0x66   :  { %1747 = vmatprep.subr.bf16.mxu0 %v3280_v12  ;;  %v3365_v12 = vld [vmem:[#allocation3 + $0x5a4] ss:$16 sps:$4 sm:$0xff]  }
  0x68   :  { %1707 = vmatpush1.bf16.msra.mxu1 %v3282_v13  ;;  %v3368_v13 = vld [vmem:[#allocation3 + $0x1ac] ss:$16 sps:$4 sm:$0xff]  }
  0x69   :  { %1748 = vmatpush1.bf16.msra.mxu0 %v3283_v14  ;;  %1840 = vmatprep.subr.bf16.mxu1 %v3290_v16  ;;  %v3363_v14 = vld [vmem:[#allocation3 + $0x5a0] ss:$16 sps:$4 sm:$0xff]   ;;  %v3371_v16 = vld [vmem:[#allocation3 + $0x5c4] ss:$16 sps:$4 sm:$0xff]  }
  0x6a   :  { %1758 = vmatprep.subr.bf16.mxu0 %v3287_v15  ;;  %v3366_v15 = vld [vmem:[#allocation3 + $0x1a8] ss:$16 sps:$4 sm:$0xff]  }
  0x6b   :  { %1709 = vmatmul.mubr.bf16.vlgmr.msra.gmra.mrb[0].mxu1 %v3859_v17 }
  0x6c   :  { %1750 = vmatmul.mubr.bf16.vlgmr.msra.gmra.mrb[0].mxu0 %v3861_v19  ;;  %1841 = vmatpush1.bf16.msra.mxu1 %v3288_v20  ;;  %v85_v20 = vcombine.high %v3868_v43, %v3868_v43  ;;  %v3399_v43 = vld [vmem:[#allocation3 + $0x660] ss:$16 sps:$4 sm:$0xff]  }
  0x6d   :  { %1759 = vmatpush1.bf16.msra.mxu0 %v3285_v18  ;;  %1842 = vmatprep.subr.bf16.mxu1 %v3296_v22  ;;  %v3374_v18 = vld [vmem:[#allocation3 + $0x1cc] ss:$16 sps:$4 sm:$0xff]   ;;  %v3372_v22 = vld [vmem:[#allocation3 + $0x1c8] ss:$16 sps:$4 sm:$0xff]  }
  0x6e   :  { %1760 = vmatprep.subr.bf16.mxu0 %v3293_v21  ;;  %1872 = vmatprep.mubr.bf16.mxu1 %v111_v63  ;;  %v3347_v63 = vld [vmem:[#allocation3 + $0x544] ss:$16 sps:$4 sm:$0xff]   ;;  %v3369_v21 = vld [vmem:[#allocation3 + $0x5c0] ss:$16 sps:$4 sm:$0xff]  }
  0x6f   :  { %1790 = vmatprep.mubr.bf16.mxu0 %v3876_v52 }
  0x70   :  { %1843 = vmatpush1.bf16.msra.mxu1 %v3294_v24  ;;  %v3380_v24 = vld [vmem:[#allocation3 + $0x1ec] ss:$16 sps:$4 sm:$0xff]  }
  0x71   :  { %1761 = vmatpush1.bf16.msra.mxu0 %v3291_v23  ;;  %1844 = vmatprep.subr.bf16.mxu1 %v3302_v26  ;;  %v3377_v23 = vld [vmem:[#allocation3 + $0x5e4] ss:$16 sps:$4 sm:$0xff]   ;;  %v3375_v26 = vld [vmem:[#allocation3 + $0x5e0] ss:$16 sps:$4 sm:$0xff]  }
  0x72   :  { %1762 = vmatprep.subr.bf16.mxu0 %v3299_v25  ;;  %v3882_v25 = vrot.slane %v85_v20, %v3849_v50  ;;  %v3384_v50 = vld [vmem:[#allocation3 + $0x208] ss:$16 sps:$4 sm:$0xff]   ;;  %v3453_v20 = vld [vmem:[#allocation3 + $0x780] ss:$16 sps:$4 sm:$0xff]  }
  0x74   :  { %1845 = vmatpush1.bf16.msra.mxu1 %v3300_v28  ;;  %v3383_v28 = vld [vmem:[#allocation3 + $0x604] ss:$16 sps:$4 sm:$0xff]  }
  0x75   :  { %1763 = vmatpush1.bf16.msra.mxu0 %v3297_v27  ;;  %1846 = vmatprep.subr.bf16.mxu1 %v3308_v30  ;;  %v3378_v27 = vld [vmem:[#allocation3 + $0x1e8] ss:$16 sps:$4 sm:$0xff]   ;;  %v101_v30 = vcombine.high %v3882_v25, %v3882_v25 }
  0x76   :  { %1764 = vmatprep.subr.bf16.mxu0 %v3305_v29  ;;  %v3386_v29 = vld [vmem:[#allocation3 + $0x20c] ss:$16 sps:$4 sm:$0xff]  }
  0x78   :  { %1847 = vmatpush1.bf16.msra.mxu1 %v3306_v32  ;;  %v3381_v32 = vld [vmem:[#allocation3 + $0x600] ss:$16 sps:$4 sm:$0xff]  }
  0x79   :  { %1765 = vmatpush1.bf16.msra.mxu0 %v3303_v31  ;;  %1848 = vmatprep.subr.bf16.mxu1 %v3314_v34  ;;  %v3888_v31 = vpack.c.bf16 %v3872_v45, %v3872_v45  ;;  %v3392_v34 = vld [vmem:[#allocation3 + $0x22c] ss:$16 sps:$4 sm:$0xff]   ;;  %v3402_v45 = vld [vmem:[#allocation3 + $0x268] ss:$16 sps:$4 sm:$0xff]  }
  0x7a   :  { %1766 = vmatprep.subr.bf16.mxu0 %v3311_v33  ;;  %v3389_v33 = vld [vmem:[#allocation3 + $0x624] ss:$16 sps:$4 sm:$0xff]  }
  0x7c   :  { %1849 = vmatpush1.bf16.msra.mxu1 %v3312_v36  ;;  %v3387_v36 = vld [vmem:[#allocation3 + $0x620] ss:$16 sps:$4 sm:$0xff]  }
  0x7d   :  { %1767 = vmatpush1.bf16.msra.mxu0 %v3309_v35  ;;  %1850 = vmatprep.subr.bf16.mxu1 %v3320_v38  ;;  %v3890_v35 = vpack.c.bf16 %v101_v30, %v101_v30  ;;  %v3395_v38 = vld [vmem:[#allocation3 + $0x644] ss:$16 sps:$4 sm:$0xff]   ;;  %v3468_v30 = vld [vmem:[#allocation3 + $0x3c8] ss:$16 sps:$4 sm:$0xff]  }
  0x7e   :  { %1768 = vmatprep.subr.bf16.mxu0 %v3317_v37  ;;  %v3390_v37 = vld [vmem:[#allocation3 + $0x228] ss:$16 sps:$4 sm:$0xff]  }
  0x80   :  { %1851 = vmatpush1.bf16.msra.mxu1 %v3318_v40  ;;  %v3393_v40 = vld [vmem:[#allocation3 + $0x640] ss:$16 sps:$4 sm:$0xff]  }
  0x81   :  { %1769 = vmatpush1.bf16.msra.mxu0 %v3315_v39  ;;  %1852 = vmatprep.subr.bf16.mxu1 %v3326_v42  ;;  %v3398_v39 = vld [vmem:[#allocation3 + $0x24c] ss:$16 sps:$4 sm:$0xff]   ;;  %v3401_v42 = vld [vmem:[#allocation3 + $0x664] ss:$16 sps:$4 sm:$0xff]  }
  0x82   :  { %1770 = vmatprep.subr.bf16.mxu0 %v3323_v41  ;;  %v3396_v41 = vld [vmem:[#allocation3 + $0x248] ss:$16 sps:$4 sm:$0xff]  }
  0x84   :  { %1853 = vmatpush1.bf16.msra.mxu1 %v3324_v47  ;;  %v3410_v47 = vld [vmem:[#allocation3 + $0x28c] ss:$16 sps:$4 sm:$0xff]  }
  0x85   :  { %1771 = vmatpush1.bf16.msra.mxu0 %v3321_v46  ;;  %1854 = vmatprep.subr.bf16.mxu1 %v3332_v51  ;;  %v3407_v46 = vld [vmem:[#allocation3 + $0x684] ss:$16 sps:$4 sm:$0xff]   ;;  %v3416_v51 = vld [vmem:[#allocation3 + $0x2ac] ss:$16 sps:$4 sm:$0xff]  }
  0x86   :  { %1772 = vmatprep.subr.bf16.mxu0 %v3329_v49  ;;  %v3413_v49 = vld [vmem:[#allocation3 + $0x6a4] ss:$16 sps:$4 sm:$0xff]  }
  0x88   :  { %1855 = vmatpush1.bf16.msra.mxu1 %v3330_v54  ;;  %v3414_v54 = vld [vmem:[#allocation3 + $0x2a8] ss:$16 sps:$4 sm:$0xff]  }
  0x89   :  { %1773 = vmatpush1.bf16.msra.mxu0 %v3327_v53  ;;  %1856 = vmatprep.subr.bf16.mxu1 %v3338_v56  ;;  %v3411_v53 = vld [vmem:[#allocation3 + $0x6a0] ss:$16 sps:$4 sm:$0xff]   ;;  %v3422_v56 = vld [vmem:[#allocation3 + $0x2cc] ss:$16 sps:$4 sm:$0xff]  }
  0x8a   :  { %1774 = vmatprep.subr.bf16.mxu0 %v3335_v55  ;;  %v3419_v55 = vld [vmem:[#allocation3 + $0x6c4] ss:$16 sps:$4 sm:$0xff]  }
  0x8c   :  { %1857 = vmatpush1.bf16.msra.mxu1 %v3336_v58  ;;  %v3420_v58 = vld [vmem:[#allocation3 + $0x2c8] ss:$16 sps:$4 sm:$0xff]  }
  0x8d   :  { %1775 = vmatpush1.bf16.msra.mxu0 %v3333_v57  ;;  %1858 = vmatprep.subr.bf16.mxu1 %v3344_v60  ;;  %v3417_v57 = vld [vmem:[#allocation3 + $0x6c0] ss:$16 sps:$4 sm:$0xff]   ;;  %v3428_v60 = vld [vmem:[#allocation3 + $0x2ec] ss:$16 sps:$4 sm:$0xff]  }
  0x8e   :  { %1776 = vmatprep.subr.bf16.mxu0 %v3341_v59  ;;  %v3425_v59 = vld [vmem:[#allocation3 + $0x6e4] ss:$16 sps:$4 sm:$0xff]  }
  0x90   :  { %1859 = vmatpush1.bf16.msra.mxu1 %v3342_v62  ;;  %v3426_v62 = vld [vmem:[#allocation3 + $0x2e8] ss:$16 sps:$4 sm:$0xff]  }
  0x91   :  { %1777 = vmatpush1.bf16.msra.mxu0 %v3339_v61  ;;  %1860 = vmatprep.subr.bf16.mxu1 %v3350_v0  ;;  %v3423_v61 = vld [vmem:[#allocation3 + $0x6e0] ss:$16 sps:$4 sm:$0xff]   ;;  %v3434_v0 = vld [vmem:[#allocation3 + $0x30c] ss:$16 sps:$4 sm:$0xff]  }
  0x92   :  { %1778 = vmatprep.subr.bf16.mxu0 %v3347_v63  ;;  %v3431_v63 = vld [vmem:[#allocation3 + $0x704] ss:$16 sps:$4 sm:$0xff]  }
  0x94   :  { %1861 = vmatpush1.bf16.msra.mxu1 %v3348_v2  ;;  %v3432_v2 = vld [vmem:[#allocation3 + $0x308] ss:$16 sps:$4 sm:$0xff]  }
  0x95   :  { %1779 = vmatpush1.bf16.msra.mxu0 %v3345_v1  ;;  %1862 = vmatprep.subr.bf16.mxu1 %v3356_v5  ;;  %v3429_v1 = vld [vmem:[#allocation3 + $0x700] ss:$16 sps:$4 sm:$0xff]   ;;  %v3440_v5 = vld [vmem:[#allocation3 + $0x32c] ss:$16 sps:$4 sm:$0xff]  }
  0x96   :  { %1780 = vmatprep.subr.bf16.mxu0 %v3353_v3  ;;  %v3437_v3 = vld [vmem:[#allocation3 + $0x724] ss:$16 sps:$4 sm:$0xff]  }
  0x98   :  { %1863 = vmatpush1.bf16.msra.mxu1 %v3354_v7  ;;  %v3438_v7 = vld [vmem:[#allocation3 + $0x328] ss:$16 sps:$4 sm:$0xff]  }
  0x99   :  { %1781 = vmatpush1.bf16.msra.mxu0 %v3351_v6  ;;  %1864 = vmatprep.subr.bf16.mxu1 %v3362_v9  ;;  %v3435_v6 = vld [vmem:[#allocation3 + $0x720] ss:$16 sps:$4 sm:$0xff]   ;;  %v3446_v9 = vld [vmem:[#allocation3 + $0x34c] ss:$16 sps:$4 sm:$0xff]  }
  0x9a   :  { %1782 = vmatprep.subr.bf16.mxu0 %v3359_v8  ;;  %v3443_v8 = vld [vmem:[#allocation3 + $0x744] ss:$16 sps:$4 sm:$0xff]  }
  0x9c   :  { %1865 = vmatpush1.bf16.msra.mxu1 %v3360_v11  ;;  %v3444_v11 = vld [vmem:[#allocation3 + $0x348] ss:$16 sps:$4 sm:$0xff]  }
  0x9d   :  { %1783 = vmatpush1.bf16.msra.mxu0 %v3357_v10  ;;  %1866 = vmatprep.subr.bf16.mxu1 %v3368_v13  ;;  %v3441_v10 = vld [vmem:[#allocation3 + $0x740] ss:$16 sps:$4 sm:$0xff]   ;;  %v3452_v13 = vld [vmem:[#allocation3 + $0x36c] ss:$16 sps:$4 sm:$0xff]  }
  0x9e   :  { %1784 = vmatprep.subr.bf16.mxu0 %v3365_v12  ;;  %v3449_v12 = vld [vmem:[#allocation3 + $0x764] ss:$16 sps:$4 sm:$0xff]  }
  0xa0   :  { %1867 = vmatpush1.bf16.msra.mxu1 %v3366_v15  ;;  %v3450_v15 = vld [vmem:[#allocation3 + $0x368] ss:$16 sps:$4 sm:$0xff]  }
  0xa1   :  { %1785 = vmatpush1.bf16.msra.mxu0 %v3363_v14  ;;  %1868 = vmatprep.subr.bf16.mxu1 %v3374_v18  ;;  %v3447_v14 = vld [vmem:[#allocation3 + $0x760] ss:$16 sps:$4 sm:$0xff]   ;;  %v3458_v18 = vld [vmem:[#allocation3 + $0x38c] ss:$16 sps:$4 sm:$0xff]  }
  0xa2   :  { %1786 = vmatprep.subr.bf16.mxu0 %v3371_v16  ;;  %v3455_v16 = vld [vmem:[#allocation3 + $0x784] ss:$16 sps:$4 sm:$0xff]  }
  0xa4   :  { %1869 = vmatpush1.bf16.msra.mxu1 %v3372_v22  ;;  %v3461_v22 = vld [vmem:[#allocation3 + $0x7a4] ss:$16 sps:$4 sm:$0xff]  }
  0xa5   :  { %1787 = vmatpush1.bf16.msra.mxu0 %v3369_v21  ;;  %1870 = vmatprep.subr.bf16.mxu1 %v3380_v24  ;;  %v3456_v21 = vld [vmem:[#allocation3 + $0x388] ss:$16 sps:$4 sm:$0xff]   ;;  %v3459_v24 = vld [vmem:[#allocation3 + $0x7a0] ss:$16 sps:$4 sm:$0xff]  }
  0xa6   :  { %1788 = vmatprep.subr.bf16.mxu0 %v3377_v23  ;;  %v3464_v23 = vld [vmem:[#allocation3 + $0x3ac] ss:$16 sps:$4 sm:$0xff]  }
  0xa8   :  { %1871 = vmatpush1.bf16.msra.mxu1 %v3378_v27  ;;  %v3467_v27 = vld [vmem:[#allocation3 + $0x7c4] ss:$16 sps:$4 sm:$0xff]  }
  0xa9   :  { %1789 = vmatpush1.bf16.msra.mxu0 %v3375_v26  ;;  %1881 = vmatprep.subr.bf16.mxu1 %v3386_v29  ;;  %v3462_v26 = vld [vmem:[#allocation3 + $0x3a8] ss:$16 sps:$4 sm:$0xff]   ;;  %v3465_v29 = vld [vmem:[#allocation3 + $0x7c0] ss:$16 sps:$4 sm:$0xff]  }
  0xaa   :  { %1799 = vmatprep.subr.bf16.mxu0 %v3383_v28  ;;  %v3470_v28 = vld [vmem:[#allocation3 + $0x3cc] ss:$16 sps:$4 sm:$0xff]  }
  0xab   :  { %1873 = vmatmul.mubr.bf16.vlgmr.msra.gmra.mrb[4].mxu1 %v3859_v17  ;;  %v3404_v17 = vld [vmem:[#allocation3 + $0x26c] ss:$16 sps:$4 sm:$0xff]  }
  0xac   :  { %1791 = vmatmul.mubr.bf16.vlgmr.msra.gmra.mrb[0].mxu0 %v3888_v31  ;;  %1882 = vmatpush1.bf16.msra.mxu1 %v3384_v50  ;;  %v3476_v50 = vld [vmem:[#allocation3 + $0x3ec] ss:$16 sps:$4 sm:$0xff]  }
  0xad   :  { %1800 = vmatpush1.bf16.msra.mxu0 %v3381_v32  ;;  %1883 = vmatprep.subr.bf16.mxu1 %v3392_v34  ;;  %v3473_v32 = vld [vmem:[#allocation3 + $0x7e4] ss:$16 sps:$4 sm:$0xff]   ;;  %v3474_v34 = vld [vmem:[#allocation3 + $0x3e8] ss:$16 sps:$4 sm:$0xff]  }
  0xae   :  { %1801 = vmatprep.subr.bf16.mxu0 %v3389_v33  ;;  %1831 = vmatprep.mubr.bf16.mxu0 %v3890_v35  ;;  %v3471_v33 = vld [vmem:[#allocation3 + $0x7e0] ss:$16 sps:$4 sm:$0xff]  }
  0xaf   :  { %1913 = vmatprep.mubr.bf16.mxu1 %v3856_v4  ;;  %v3408_v4 = vld [vmem:[#allocation3 + $0x288] ss:$16 sps:$4 sm:$0xff]  }
  0xb0   :  { %1884 = vmatpush1.bf16.msra.mxu1 %v3390_v37  ;;  %v3478_v37 = vld [vmem:[#allocation3 + $0x408] ss:$16 sps:$4 sm:$0xff]  }
  0xb1   :  { %1802 = vmatpush1.bf16.msra.mxu0 %v3387_v36  ;;  %1885 = vmatprep.subr.bf16.mxu1 %v3398_v39  ;;  %v3480_v36 = vld [vmem:[#allocation3 + $0x40c] ss:$16 sps:$4 sm:$0xff]  }
  0xb2   :  { %1803 = vmatprep.subr.bf16.mxu0 %v3395_v38  ;;  %v3898_v38 = vpack.c.bf16 %v3882_v25, %v3882_v25  ;;  %v3483_v39 = vld [vmem:[#allocation3 + $0x42c] ss:$16 sps:$4 sm:$0xff]   ;;  %v3577_v25 = vld [vmem:[#allocation6 + $0x10] ss:$8 sps:$4 sm:$0xff]  }
  0xb4   :  { %1886 = vmatpush1.bf16.msra.mxu1 %v3396_v41  ;;  %v3576_v41 = vld [vmem:[#allocation6 + $0x4] ss:$8 sps:$4 sm:$0xff]  }
  0xb5   :  { %1804 = vmatpush1.bf16.msra.mxu0 %v3393_v40  ;;  %1887 = vmatprep.subr.bf16.mxu1 %v3404_v17  ;;  %v3574_v40 = vld [vmem:[#allocation6] ss:$8 sps:$4 sm:$0xff]   ;;  %v3579_v17 = vld [vmem:[#allocation6 + $0x14] ss:$8 sps:$4 sm:$0xff]  }
  0xb6   :  { %1805 = vmatprep.subr.bf16.mxu0 %v3401_v42  ;;  %v3481_v42 = vld [vmem:[#allocation3 + $0x428] ss:$16 sps:$4 sm:$0xff]  }
  0xb8   :  { %1888 = vmatpush1.bf16.msra.mxu1 %v3402_v45  ;;  %v3582_v45 = vld [vmem:[#allocation6 + $0x24] ss:$8 sps:$4 sm:$0xff]  }
  0xb9   :  { %1806 = vmatpush1.bf16.msra.mxu0 %v3399_v43  ;;  %1889 = vmatprep.subr.bf16.mxu1 %v3410_v47  ;;  %v3486_v43 = vld [vmem:[#allocation3 + $0x44c] ss:$16 sps:$4 sm:$0xff]  }
  0xba   :  { %1807 = vmatprep.subr.bf16.mxu0 %v3407_v46  ;;  %v3484_v46 = vld [vmem:[#allocation3 + $0x448] ss:$16 sps:$4 sm:$0xff]   ;;  %v3489_v47 = vld [vmem:[#allocation3 + $0x46c] ss:$16 sps:$4 sm:$0xff]  }
  0xbc   :  { %1890 = vmatpush1.bf16.msra.mxu1 %v3408_v4  ;;  %v3492_v4 = vld [vmem:[#allocation3 + $0x48c] ss:$16 sps:$4 sm:$0xff]  }
  0xbd   :  { %1808 = vmatpush1.bf16.msra.mxu0 %v3405_v48  ;;  %1891 = vmatprep.subr.bf16.mxu1 %v3416_v51  ;;  %v3487_v48 = vld [vmem:[#allocation3 + $0x468] ss:$16 sps:$4 sm:$0xff]   ;;  %v3588_v51 = vld [vmem:[#allocation6 + $0x44] ss:$8 sps:$4 sm:$0xff]  }
  0xbe   :  { %1809 = vmatprep.subr.bf16.mxu0 %v3413_v49  ;;  %v3585_v49 = vld [vmem:[#allocation6 + $0x34] ss:$8 sps:$4 sm:$0xff]  }
  0xc0   :  { %1892 = vmatpush1.bf16.msra.mxu1 %v3414_v54  ;;  %v3495_v54 = vld [vmem:[#allocation3 + $0x4ac] ss:$16 sps:$4 sm:$0xff]  }
  0xc1   :  { %1810 = vmatpush1.bf16.msra.mxu0 %v3411_v53  ;;  %1893 = vmatprep.subr.bf16.mxu1 %v3422_v56  ;;  %v3490_v53 = vld [vmem:[#allocation3 + $0x488] ss:$16 sps:$4 sm:$0xff]   ;;  %v3591_v56 = vld [vmem:[#allocation6 + $0x54] ss:$8 sps:$4 sm:$0xff]  }
  0xc2   :  { %1811 = vmatprep.subr.bf16.mxu0 %v3419_v55  ;;  %v3586_v55 = vld [vmem:[#allocation6 + $0x40] ss:$8 sps:$4 sm:$0xff]  }
  0xc4   :  { %1894 = vmatpush1.bf16.msra.mxu1 %v3420_v58  ;;  %v3498_v58 = vld [vmem:[#allocation3 + $0x4cc] ss:$16 sps:$4 sm:$0xff]  }
  0xc5   :  { %1812 = vmatpush1.bf16.msra.mxu0 %v3417_v57  ;;  %1895 = vmatprep.subr.bf16.mxu1 %v3428_v60  ;;  %v3493_v57 = vld [vmem:[#allocation3 + $0x4a8] ss:$16 sps:$4 sm:$0xff]   ;;  %v3594_v60 = vld [vmem:[#allocation6 + $0x64] ss:$8 sps:$4 sm:$0xff]  }
  0xc6   :  { %1813 = vmatprep.subr.bf16.mxu0 %v3425_v59  ;;  %v3589_v59 = vld [vmem:[#allocation6 + $0x50] ss:$8 sps:$4 sm:$0xff]  }
  0xc8   :  { %1896 = vmatpush1.bf16.msra.mxu1 %v3426_v62  ;;  %v3501_v62 = vld [vmem:[#allocation3 + $0x4ec] ss:$16 sps:$4 sm:$0xff]  }
  0xc9   :  { %1814 = vmatpush1.bf16.msra.mxu0 %v3423_v61  ;;  %1897 = vmatprep.subr.bf16.mxu1 %v3434_v0  ;;  %v3496_v61 = vld [vmem:[#allocation3 + $0x4c8] ss:$16 sps:$4 sm:$0xff]   ;;  %v3597_v0 = vld [vmem:[#allocation6 + $0x74] ss:$8 sps:$4 sm:$0xff]  }
  0xca   :  { %1815 = vmatprep.subr.bf16.mxu0 %v3431_v63  ;;  %v3592_v63 = vld [vmem:[#allocation6 + $0x60] ss:$8 sps:$4 sm:$0xff]  }
  0xcc   :  { %1898 = vmatpush1.bf16.msra.mxu1 %v3432_v2  ;;  %v3504_v2 = vld [vmem:[#allocation3 + $0x50c] ss:$16 sps:$4 sm:$0xff]  }
  0xcd   :  { %1816 = vmatpush1.bf16.msra.mxu0 %v3429_v1  ;;  %1899 = vmatprep.subr.bf16.mxu1 %v3440_v5  ;;  %v3499_v1 = vld [vmem:[#allocation3 + $0x4e8] ss:$16 sps:$4 sm:$0xff]   ;;  %v3600_v5 = vld [vmem:[#allocation6 + $0x84] ss:$8 sps:$4 sm:$0xff]  }
  0xce   :  { %1817 = vmatprep.subr.bf16.mxu0 %v3437_v3  ;;  %v3595_v3 = vld [vmem:[#allocation6 + $0x70] ss:$8 sps:$4 sm:$0xff]  }
  0xd0   :  { %1900 = vmatpush1.bf16.msra.mxu1 %v3438_v7  ;;  %v3507_v7 = vld [vmem:[#allocation3 + $0x52c] ss:$16 sps:$4 sm:$0xff]  }
  0xd1   :  { %1818 = vmatpush1.bf16.msra.mxu0 %v3435_v6  ;;  %1901 = vmatprep.subr.bf16.mxu1 %v3446_v9  ;;  %v3502_v6 = vld [vmem:[#allocation3 + $0x508] ss:$16 sps:$4 sm:$0xff]   ;;  %v3603_v9 = vld [vmem:[#allocation6 + $0x94] ss:$8 sps:$4 sm:$0xff]  }
  0xd2   :  { %1819 = vmatprep.subr.bf16.mxu0 %v3443_v8  ;;  %v3598_v8 = vld [vmem:[#allocation6 + $0x80] ss:$8 sps:$4 sm:$0xff]  }
  0xd4   :  { %1902 = vmatpush1.bf16.msra.mxu1 %v3444_v11  ;;  %v3510_v11 = vld [vmem:[#allocation3 + $0x54c] ss:$16 sps:$4 sm:$0xff]  }
  0xd5   :  { %1820 = vmatpush1.bf16.msra.mxu0 %v3441_v10  ;;  %1903 = vmatprep.subr.bf16.mxu1 %v3452_v13  ;;  %v3505_v10 = vld [vmem:[#allocation3 + $0x528] ss:$16 sps:$4 sm:$0xff]   ;;  %v3606_v13 = vld [vmem:[#allocation6 + $0xa4] ss:$8 sps:$4 sm:$0xff]  }
  0xd6   :  { %1821 = vmatprep.subr.bf16.mxu0 %v3449_v12  ;;  %v3601_v12 = vld [vmem:[#allocation6 + $0x90] ss:$8 sps:$4 sm:$0xff]  }
  0xd8   :  { %1904 = vmatpush1.bf16.msra.mxu1 %v3450_v15  ;;  %v3513_v15 = vld [vmem:[#allocation3 + $0x56c] ss:$16 sps:$4 sm:$0xff]  }
  0xd9   :  { %1822 = vmatpush1.bf16.msra.mxu0 %v3447_v14  ;;  %1905 = vmatprep.subr.bf16.mxu1 %v3458_v18  ;;  %v3508_v14 = vld [vmem:[#allocation3 + $0x548] ss:$16 sps:$4 sm:$0xff]   ;;  %v3609_v18 = vld [vmem:[#allocation6 + $0xb4] ss:$8 sps:$4 sm:$0xff]  }
  0xda   :  { %1823 = vmatprep.subr.bf16.mxu0 %v3455_v16  ;;  %v3604_v16 = vld [vmem:[#allocation6 + $0xa0] ss:$8 sps:$4 sm:$0xff]  }
  0xdc   :  { %1906 = vmatpush1.bf16.msra.mxu1 %v3456_v21  ;;  %v3516_v21 = vld [vmem:[#allocation3 + $0x58c] ss:$16 sps:$4 sm:$0xff]  }
  0xdd   :  { %1824 = vmatpush1.bf16.msra.mxu0 %v3453_v20  ;;  %1907 = vmatprep.subr.bf16.mxu1 %v3464_v23  ;;  %v3511_v20 = vld [vmem:[#allocation3 + $0x568] ss:$16 sps:$4 sm:$0xff]   ;;  %v3612_v23 = vld [vmem:[#allocation6 + $0xc4] ss:$8 sps:$4 sm:$0xff]  }
  0xde   :  { %1825 = vmatprep.subr.bf16.mxu0 %v3461_v22  ;;  %v3607_v22 = vld [vmem:[#allocation6 + $0xb0] ss:$8 sps:$4 sm:$0xff]  }
  0xe0   :  { %1908 = vmatpush1.bf16.msra.mxu1 %v3462_v26  ;;  %v3519_v26 = vld [vmem:[#allocation3 + $0x5ac] ss:$16 sps:$4 sm:$0xff]  }
  0xe1   :  { %1826 = vmatpush1.bf16.msra.mxu0 %v3459_v24  ;;  %1909 = vmatprep.subr.bf16.mxu1 %v3470_v28  ;;  %v3514_v24 = vld [vmem:[#allocation3 + $0x588] ss:$16 sps:$4 sm:$0xff]   ;;  %v3615_v28 = vld [vmem:[#allocation6 + $0xd4] ss:$8 sps:$4 sm:$0xff]  }
  0xe2   :  { %1827 = vmatprep.subr.bf16.mxu0 %v3467_v27  ;;  %v3610_v27 = vld [vmem:[#allocation6 + $0xc0] ss:$8 sps:$4 sm:$0xff]  }
  0xe4   :  { %1910 = vmatpush1.bf16.msra.mxu1 %v3468_v30  ;;  %v3522_v30 = vld [vmem:[#allocation3 + $0x5cc] ss:$16 sps:$4 sm:$0xff]  }
  0xe5   :  { %1828 = vmatpush1.bf16.msra.mxu0 %v3465_v29  ;;  %1911 = vmatprep.subr.bf16.mxu1 %v3476_v50  ;;  %v3517_v29 = vld [vmem:[#allocation3 + $0x5a8] ss:$16 sps:$4 sm:$0xff]  }
  0xe6   :  { %1829 = vmatprep.subr.bf16.mxu0 %v3473_v32  ;;  %v3613_v32 = vld [vmem:[#allocation6 + $0xd0] ss:$8 sps:$4 sm:$0xff]  }
  0xe7   :  { %v3520_v50 = vld [vmem:[#allocation3 + $0x5c8] ss:$16 sps:$4 sm:$0xff]  }
  0xe8   :  { %1912 = vmatpush1.bf16.msra.mxu1 %v3474_v34  ;;  %v3523_v34 = vld [vmem:[#allocation3 + $0x5e8] ss:$16 sps:$4 sm:$0xff]  }
  0xe9   :  { %1830 = vmatpush1.bf16.msra.mxu0 %v3471_v33  ;;  %1922 = vmatprep.subr.bf16.mxu1 %v3480_v36  ;;  %v3525_v33 = vld [vmem:[#allocation3 + $0x5ec] ss:$16 sps:$4 sm:$0xff]  }
  0xea   :  { %2408 = vmatprep.subr.bf16.mxu0 %v3576_v41  ;;  %v3528_v36 = vld [vmem:[#allocation3 + $0x60c] ss:$16 sps:$4 sm:$0xff]  }
  0xeb   :  { %1914 = vmatmul.mubr.bf16.vlgmr.msra.gmra.mrb[4].mxu1 %v3861_v19  ;;  %v3580_v19 = vld [vmem:[#allocation6 + $0x20] ss:$8 sps:$4 sm:$0xff]   ;;  %v3534_v41 = vld [vmem:[#allocation3 + $0x64c] ss:$16 sps:$4 sm:$0xff]  }
  0xec   :  { %1832 = vmatmul.mubr.bf16.vlgmr.msra.gmra.mrb[0].mxu0 %v3898_v38  ;;  %1923 = vmatpush1.bf16.msra.mxu1 %v3478_v37  ;;  %v3526_v37 = vld [vmem:[#allocation3 + $0x608] ss:$16 sps:$4 sm:$0xff]  }
  0xed   :  { %1954 = vmatprep.mubr.bf16.mxu1 %v3876_v52  ;;  %1924 = vmatprep.subr.bf16.mxu1 %v3483_v39  ;;  %v3583_v52 = vld [vmem:[#allocation6 + $0x30] ss:$8 sps:$4 sm:$0xff]   ;;  %v3531_v39 = vld [vmem:[#allocation3 + $0x62c] ss:$16 sps:$4 sm:$0xff]  }
  0xee   :  { %2409 = vmatpush1.bf16.msra.mxu0 %v3574_v40  ;;  %v3529_v40 = vld [vmem:[#allocation3 + $0x628] ss:$16 sps:$4 sm:$0xff]  }
  0xef   :  { %2410 = vmatprep.subr.bf16.mxu0 %v3579_v17  ;;  %v3537_v17 = vld [vmem:[#allocation3 + $0x66c] ss:$16 sps:$4 sm:$0xff]  }
  0xf0   :  { %1925 = vmatpush1.bf16.msra.mxu1 %v3481_v42  ;;  %v3532_v42 = vld [vmem:[#allocation3 + $0x648] ss:$16 sps:$4 sm:$0xff]  }
  0xf1   :  { %1926 = vmatprep.subr.bf16.mxu1 %v3486_v43  ;;  %v3535_v43 = vld [vmem:[#allocation3 + $0x668] ss:$16 sps:$4 sm:$0xff]  }
  0xf2   :  { %2411 = vmatpush1.bf16.msra.mxu0 %v3577_v25  ;;  %v3540_v25 = vld [vmem:[#allocation3 + $0x68c] ss:$16 sps:$4 sm:$0xff]  }
  0xf3   :  { %2412 = vmatprep.subr.bf16.mxu0 %v3582_v45  ;;  %v3538_v45 = vld [vmem:[#allocation3 + $0x688] ss:$16 sps:$4 sm:$0xff]  }
  0xf4   :  { %1927 = vmatpush1.bf16.msra.mxu1 %v3484_v46  ;;  %v3543_v46 = vld [vmem:[#allocation3 + $0x6ac] ss:$16 sps:$4 sm:$0xff]  }
  0xf5   :  { %1928 = vmatprep.subr.bf16.mxu1 %v3489_v47  ;;  %v3546_v47 = vld [vmem:[#allocation3 + $0x6cc] ss:$16 sps:$4 sm:$0xff]  }
  0xf6   :  { %2413 = vmatpush1.bf16.msra.mxu0 %v3580_v19  ;;  %v3618_v19 = vld [vmem:[#allocation6 + $0xe4] ss:$8 sps:$4 sm:$0xff]  }
  0xf7   :  { %2414 = vmatprep.subr.bf16.mxu0 %v3585_v49 }
  0xf8   :  { %1929 = vmatpush1.bf16.msra.mxu1 %v3487_v48  ;;  %v3616_v48 = vld [vmem:[#allocation6 + $0xe0] ss:$8 sps:$4 sm:$0xff]  }
  0xf9   :  { %1930 = vmatprep.subr.bf16.mxu1 %v3492_v4 }
  0xfa   :  { %2415 = vmatpush1.bf16.msra.mxu0 %v3583_v52  ;;  %v3544_v52 = vld [vmem:[#allocation3 + $0x6c8] ss:$16 sps:$4 sm:$0xff]  }
  0xfb   :  { %2416 = vmatprep.subr.bf16.mxu0 %v3588_v51 }
  0xfc   :  { %1931 = vmatpush1.bf16.msra.mxu1 %v3490_v53  ;;  %v3549_v53 = vld [vmem:[#allocation3 + $0x6ec] ss:$16 sps:$4 sm:$0xff]  }
  0xfd   :  { %1932 = vmatprep.subr.bf16.mxu1 %v3495_v54  ;;  %v3621_v54 = vld [vmem:[#allocation6 + $0xf4] ss:$8 sps:$4 sm:$0xff]  }
  0xfe   :  { %2417 = vmatpush1.bf16.msra.mxu0 %v3586_v55  ;;  %v3619_v55 = vld [vmem:[#allocation6 + $0xf0] ss:$8 sps:$4 sm:$0xff]  }
  0xff   :  { %2418 = vmatprep.subr.bf16.mxu0 %v3591_v56  ;;  %v3547_v56 = vld [vmem:[#allocation3 + $0x6e8] ss:$16 sps:$4 sm:$0xff]  }
 0x100   :  { %1933 = vmatpush1.bf16.msra.mxu1 %v3493_v57  ;;  %v3552_v57 = vld [vmem:[#allocation3 + $0x70c] ss:$16 sps:$4 sm:$0xff]  }
 0x101   :  { %1934 = vmatprep.subr.bf16.mxu1 %v3498_v58  ;;  %v3624_v58 = vld [vmem:[#allocation6 + $0x104] ss:$8 sps:$4 sm:$0xff]  }
 0x102   :  { %2419 = vmatpush1.bf16.msra.mxu0 %v3589_v59  ;;  %v3550_v59 = vld [vmem:[#allocation3 + $0x708] ss:$16 sps:$4 sm:$0xff]  }
 0x103   :  { %2420 = vmatprep.subr.bf16.mxu0 %v3594_v60  ;;  %v3555_v60 = vld [vmem:[#allocation3 + $0x72c] ss:$16 sps:$4 sm:$0xff]  }
 0x104   :  { %1935 = vmatpush1.bf16.msra.mxu1 %v3496_v61  ;;  %v3553_v61 = vld [vmem:[#allocation3 + $0x728] ss:$16 sps:$4 sm:$0xff]  }
 0x105   :  { %1936 = vmatprep.subr.bf16.mxu1 %v3501_v62  ;;  %v3558_v62 = vld [vmem:[#allocation3 + $0x74c] ss:$16 sps:$4 sm:$0xff]  }
 0x106   :  { %2421 = vmatpush1.bf16.msra.mxu0 %v3592_v63  ;;  %v3556_v63 = vld [vmem:[#allocation3 + $0x748] ss:$16 sps:$4 sm:$0xff]  }
 0x107   :  { %2422 = vmatprep.subr.bf16.mxu0 %v3597_v0  ;;  %v3561_v0 = vld [vmem:[#allocation3 + $0x76c] ss:$16 sps:$4 sm:$0xff]  }
 0x108   :  { %1937 = vmatpush1.bf16.msra.mxu1 %v3499_v1  ;;  %v3559_v1 = vld [vmem:[#allocation3 + $0x768] ss:$16 sps:$4 sm:$0xff]  }
 0x109   :  { %1938 = vmatprep.subr.bf16.mxu1 %v3504_v2  ;;  %v3564_v2 = vld [vmem:[#allocation3 + $0x78c] ss:$16 sps:$4 sm:$0xff]  }
 0x10a   :  { %2423 = vmatpush1.bf16.msra.mxu0 %v3595_v3  ;;  %v3562_v3 = vld [vmem:[#allocation3 + $0x788] ss:$16 sps:$4 sm:$0xff]  }
 0x10b   :  { %2424 = vmatprep.subr.bf16.mxu0 %v3600_v5  ;;  %v3567_v5 = vld [vmem:[#allocation3 + $0x7ac] ss:$16 sps:$4 sm:$0xff]  }
 0x10c   :  { %1939 = vmatpush1.bf16.msra.mxu1 %v3502_v6  ;;  %v3565_v6 = vld [vmem:[#allocation3 + $0x7a8] ss:$16 sps:$4 sm:$0xff]  }
 0x10d   :  { %1940 = vmatprep.subr.bf16.mxu1 %v3507_v7  ;;  %v3570_v7 = vld [vmem:[#allocation3 + $0x7cc] ss:$16 sps:$4 sm:$0xff]  }
 0x10e   :  { %2425 = vmatpush1.bf16.msra.mxu0 %v3598_v8  ;;  %v3568_v8 = vld [vmem:[#allocation3 + $0x7c8] ss:$16 sps:$4 sm:$0xff]  }
 0x10f   :  { %2426 = vmatprep.subr.bf16.mxu0 %v3603_v9  ;;  %v3573_v9 = vld [vmem:[#allocation3 + $0x7ec] ss:$16 sps:$4 sm:$0xff]  }
 0x110   :  { %1941 = vmatpush1.bf16.msra.mxu1 %v3505_v10  ;;  %v3571_v10 = vld [vmem:[#allocation3 + $0x7e8] ss:$16 sps:$4 sm:$0xff]  }
 0x111   :  { %1942 = vmatprep.subr.bf16.mxu1 %v3510_v11  ;;  %v3907_v11 = vsub.s32 0, %v3846_v44 }
 0x112   :  { %2427 = vmatpush1.bf16.msra.mxu0 %v3601_v12  ;;  %v3912_v12 = vld [vmem:[%s3999_s2] sm:$0xf] }
 0x113   :  { %2428 = vmatprep.subr.bf16.mxu0 %v3606_v13  ;;  %v382_v13 = vsub.s32 1, %v3846_v44 }
 0x114   :  { %1943 = vmatpush1.bf16.msra.mxu1 %v3508_v14  ;;  %v379_v14 = vrot.slane %v3912_v12, %v3907_v11 }
 0x115   :  { %1944 = vmatprep.subr.bf16.mxu1 %v3513_v15  ;;  %v383_v15 = vrot.slane %v3912_v12, %v382_v13 }
 0x116   :  { %2429 = vmatpush1.bf16.msra.mxu0 %v3604_v16 }
 0x117   :  { %2430 = vmatprep.subr.bf16.mxu0 %v3609_v18 }
 0x118   :  { %1945 = vmatpush1.bf16.msra.mxu1 %v3511_v20 }
 0x119   :  { %1946 = vmatprep.subr.bf16.mxu1 %v3516_v21 }
 0x11a   :  { %2431 = vmatpush1.bf16.msra.mxu0 %v3607_v22 }
 0x11b   :  { %2432 = vmatprep.subr.bf16.mxu0 %v3612_v23 }
 0x11c   :  { %1947 = vmatpush1.bf16.msra.mxu1 %v3514_v24 }
 0x11d   :  { %1948 = vmatprep.subr.bf16.mxu1 %v3519_v26 }
 0x11e   :  { %2433 = vmatpush1.bf16.msra.mxu0 %v3610_v27 }
 0x11f   :  { %2434 = vmatprep.subr.bf16.mxu0 %v3615_v28 }
 0x120   :  { %1949 = vmatpush1.bf16.msra.mxu1 %v3517_v29  ;;  %v3622_v29 = vld [vmem:[#allocation6 + $0x100] ss:$8 sps:$4 sm:$0xff]  }
 0x121   :  { %1950 = vmatprep.subr.bf16.mxu1 %v3522_v30 }
 0x122   :  { %2435 = vmatpush1.bf16.msra.mxu0 %v3613_v32  ;;  %v3627_v32 = vld [vmem:[#allocation6 + $0x114] ss:$8 sps:$4 sm:$0xff]  }
 0x123   :  { %2436 = vmatprep.subr.bf16.mxu0 %v3618_v19  ;;  %v3649_v19 = vld [vmem:[#allocation6 + $0x190] ss:$8 sps:$4 sm:$0xff]  }
 0x124   :  { %1951 = vmatpush1.bf16.msra.mxu1 %v3520_v50  ;;  %v3625_v50 = vld [vmem:[#allocation6 + $0x110] ss:$8 sps:$4 sm:$0xff]  }
 0x125   :  { %1952 = vmatprep.subr.bf16.mxu1 %v3525_v33  ;;  %v3630_v33 = vld [vmem:[#allocation6 + $0x124] ss:$8 sps:$4 sm:$0xff]  }
 0x126   :  { %2437 = vmatpush1.bf16.msra.mxu0 %v3616_v48  ;;  %v3652_v48 = vld [vmem:[#allocation6 + $0x1a0] ss:$8 sps:$4 sm:$0xff]  }
 0x127   :  { %2438 = vmatprep.subr.bf16.mxu0 %v3621_v54  ;;  %v3661_v54 = vld [vmem:[#allocation6 + $0x1d0] ss:$8 sps:$4 sm:$0xff]  }
 0x128   :  { %1953 = vmatpush1.bf16.msra.mxu1 %v3523_v34  ;;  %v3628_v34 = vld [vmem:[#allocation6 + $0x120] ss:$8 sps:$4 sm:$0xff]  }
 0x129   :  { %1963 = vmatprep.subr.bf16.mxu1 %v3528_v36  ;;  %v3633_v36 = vld [vmem:[#allocation6 + $0x134] ss:$8 sps:$4 sm:$0xff]  }
 0x12a   :  { %2439 = vmatpush1.bf16.msra.mxu0 %v3619_v55  ;;  %v3666_v55 = vld [vmem:[#allocation6 + $0x1e4] ss:$8 sps:$4 sm:$0xff]  }
 0x12b   :  { %1955 = vmatmul.mubr.bf16.vlgmr.msra.gmra.mrb[4].mxu1 %v3888_v31  ;;  %v3541_v31 = vld [vmem:[#allocation3 + $0x6a8] ss:$16 sps:$4 sm:$0xff]   ;;  %2449 = vmatprep.subr.bf16.mxu0 %v3624_v58 }
 0x12c   :  { %1964 = vmatpush1.bf16.msra.mxu1 %v3526_v37  ;;  %1995 = vmatprep.mubr.bf16.mxu1 %v3890_v35  ;;  %v3631_v37 = vld [vmem:[#allocation6 + $0x130] ss:$8 sps:$4 sm:$0xff]  }
 0x12d   :  { %1965 = vmatprep.subr.bf16.mxu1 %v3531_v39  ;;  %v3636_v39 = vld [vmem:[#allocation6 + $0x144] ss:$8 sps:$4 sm:$0xff]   ;;  %v3667_v58 = vld [vmem:[#allocation6 + $0x1f0] ss:$8 sps:$4 sm:$0xff]  }
 0x130   :  { %1966 = vmatpush1.bf16.msra.mxu1 %v3529_v40  ;;  %v3634_v40 = vld [vmem:[#allocation6 + $0x140] ss:$8 sps:$4 sm:$0xff]  }
 0x131   :  { %1967 = vmatprep.subr.bf16.mxu1 %v3534_v41  ;;  %v3639_v41 = vld [vmem:[#allocation6 + $0x154] ss:$8 sps:$4 sm:$0xff]  }
 0x134   :  { %1968 = vmatpush1.bf16.msra.mxu1 %v3532_v42  ;;  %v3637_v42 = vld [vmem:[#allocation6 + $0x150] ss:$8 sps:$4 sm:$0xff]  }
 0x135   :  { %1969 = vmatprep.subr.bf16.mxu1 %v3537_v17  ;;  %v3642_v17 = vld [vmem:[#allocation6 + $0x164] ss:$8 sps:$4 sm:$0xff]  }
 0x138   :  { %1970 = vmatpush1.bf16.msra.mxu1 %v3535_v43  ;;  %v3640_v43 = vld [vmem:[#allocation6 + $0x160] ss:$8 sps:$4 sm:$0xff]  }
 0x139   :  { %1971 = vmatprep.subr.bf16.mxu1 %v3540_v25  ;;  %v3645_v25 = vld [vmem:[#allocation6 + $0x174] ss:$8 sps:$4 sm:$0xff]  }
 0x13c   :  { %1972 = vmatpush1.bf16.msra.mxu1 %v3538_v45  ;;  %v3643_v45 = vld [vmem:[#allocation6 + $0x170] ss:$8 sps:$4 sm:$0xff]  }
 0x13d   :  { %1973 = vmatprep.subr.bf16.mxu1 %v3543_v46  ;;  %v3648_v46 = vld [vmem:[#allocation6 + $0x184] ss:$8 sps:$4 sm:$0xff]  }
 0x13e   :  { %v1710_v35 = vpop.f32.mrb[0].mxu1 }
 0x13f   :  { %v1712_v4 = vpop.f32.mrb[1].mxu1  ;;  %v1711_v16 = vadd.f32 %v1710_v35, %v379_v14  ;;  %v3654_v35 = vld [vmem:[#allocation6 + $0x1a4] ss:$8 sps:$4 sm:$0xff]  }
 0x140   :  { %v1714_v49 = vpop.f32.mrb[2].mxu1  ;;  %1974 = vmatpush1.bf16.msra.mxu1 %v3541_v31  ;;  %v1713_v18 = vadd.f32 %v1712_v4, %v383_v15  ;;  %v3646_v31 = vld [vmem:[#allocation6 + $0x180] ss:$8 sps:$4 sm:$0xff]   ;;  %v3657_v4 = vld [vmem:[#allocation6 + $0x1b4] ss:$8 sps:$4 sm:$0xff]  }
 0x141   :  { %v1715_v51 = vpop.f32.mrb[3].mxu1  ;;  %1975 = vmatprep.subr.bf16.mxu1 %v3546_v47  ;;  %v3651_v47 = vld [vmem:[#allocation6 + $0x194] ss:$8 sps:$4 sm:$0xff]   ;;  %v3655_v49 = vld [vmem:[#allocation6 + $0x1b0] ss:$8 sps:$4 sm:$0xff]   ;;  %v3672_v15 = vld [vmem:[%s4002_s5 + $0x48] sm:$0xff]  }
 0x142   :  { %v3658_v51 = vld [vmem:[#allocation6 + $0x1c0] ss:$8 sps:$4 sm:$0xff]  }
 0x144   :  { %1976 = vmatpush1.bf16.msra.mxu1 %v3544_v52  ;;  %v3660_v52 = vld [vmem:[#allocation6 + $0x1c4] ss:$8 sps:$4 sm:$0xff]  }
 0x145   :  { %1977 = vmatprep.subr.bf16.mxu1 %v3549_v53  ;;  %v3663_v53 = vld [vmem:[#allocation6 + $0x1d4] ss:$8 sps:$4 sm:$0xff]  }
 0x148   :  { %1978 = vmatpush1.bf16.msra.mxu1 %v3547_v56  ;;  %v3664_v56 = vld [vmem:[#allocation6 + $0x1e0] ss:$8 sps:$4 sm:$0xff]  }
 0x149   :  { %1979 = vmatprep.subr.bf16.mxu1 %v3552_v57  ;;  %v3669_v57 = vld [vmem:[#allocation6 + $0x1f4] ss:$8 sps:$4 sm:$0xff]  }
 0x14c   :  { %1980 = vmatpush1.bf16.msra.mxu1 %v3550_v59  ;;  %v3670_v59 = vld [vmem:[%s4002_s5 + $0x40] sm:$0xff]  }
 0x14d   :  { %1981 = vmatprep.subr.bf16.mxu1 %v3555_v60  ;;  %v386_v60 = vsub.s32 2, %v3846_v44 }
 0x150   :  { %1982 = vmatpush1.bf16.msra.mxu1 %v3553_v61  ;;  %v390_v61 = vsub.s32 3, %v3846_v44 }
 0x151   :  { %1983 = vmatprep.subr.bf16.mxu1 %v3558_v62  ;;  %v387_v62 = vrot.slane %v3912_v12, %v386_v60 }
 0x154   :  { %1984 = vmatpush1.bf16.msra.mxu1 %v3556_v63  ;;  %v391_v63 = vrot.slane %v3912_v12, %v390_v61  ;;  %v3673_v12 = vld [vmem:[%s4002_s5 + $0x8] sm:$0xff]  }
 0x155   :  { %1985 = vmatprep.subr.bf16.mxu1 %v3561_v0 }
 0x158   :  { %1986 = vmatpush1.bf16.msra.mxu1 %v3559_v1 }
 0x159   :  { %1987 = vmatprep.subr.bf16.mxu1 %v3564_v2 }
 0x15c   :  { %1988 = vmatpush1.bf16.msra.mxu1 %v3562_v3 }
 0x15d   :  { %1989 = vmatprep.subr.bf16.mxu1 %v3567_v5 }
 0x160   :  { %1990 = vmatpush1.bf16.msra.mxu1 %v3565_v6 }
 0x161   :  { %1991 = vmatprep.subr.bf16.mxu1 %v3570_v7 }
 0x164   :  { %1992 = vmatpush1.bf16.msra.mxu1 %v3568_v8 }
 0x165   :  { %1993 = vmatprep.subr.bf16.mxu1 %v3573_v9 }
 0x168   :  { %1994 = vmatpush1.bf16.msra.mxu1 %v3571_v10  ;;  %v3671_v10 = vld [vmem:[%s4002_s5] sm:$0xff]  }
 0x16b   :  { %1996 = vmatmul.mubr.bf16.vlgmr.msra.gmra.mrb[4].mxu1 %v3898_v38 }
 0x1bf   :  { %v1833_v38 = vpop.f32.mrb[0].mxu0 }
 0x1c0   :  { %v3145_v20 = vadd.f32 %v1833_v38, %v1711_v16  ;;  %v1835_v21 = vpop.f32.mrb[1].mxu0  ;;  %v3674_v16 = vld [vmem:[%s4002_s5 + $0x50] sm:$0xff]   ;;  %v3676_v38 = vld [vmem:[%s4002_s5 + $0x58] sm:$0xff]  }
 0x1c1   :  { %v3147_v22 = vadd.f32 %v1835_v21, %v1713_v18  ;;  %v1837_v23 = vpop.f32.mrb[2].mxu0  ;;  %v3675_v18 = vld [vmem:[%s4002_s5 + $0x10] sm:$0xff]   ;;  %v3678_v21 = vld [vmem:[%s4002_s5 + $0x60] sm:$0xff]  }
 0x1c2   :  { %v2004_v24 = vmax.f32 %v3145_v20, 0.0  ;;  %v1838_v26 = vpop.f32.mrb[3].mxu0  ;;  %v3677_v20 = vld [vmem:[%s4002_s5 + $0x18] sm:$0xff]   ;;  %v3680_v23 = vld [vmem:[%s4002_s5 + $0x68] sm:$0xff]  }
 0x1c3   :  { %v2005_v27 = vmax.f32 %v3147_v22, 0.0  ;;  %v3679_v22 = vld [vmem:[%s4002_s5 + $0x20] sm:$0xff]   ;;  %v3682_v26 = vld [vmem:[%s4002_s5 + $0x70] sm:$0xff]  }
 0x1c4   :  { %v2008_v30 = vpack.c.bf16 %v2004_v24, %v2004_v24  ;;  %v3681_v24 = vld [vmem:[%s4002_s5 + $0x28] sm:$0xff]  }
 0x1c5   :  { %v2009_v28 = vpack.c.bf16 %v2005_v27, %v2005_v27  ;;  %v3683_v27 = vld [vmem:[%s4002_s5 + $0x30] sm:$0xff]  }
 0x1c7   :  { %2440 = vmatprep.mubr.bf16.mxu0 %v2009_v28  ;;  %v3684_v28 = vld [vmem:[%s4002_s5 + $0x78] sm:$0xff]  }
 0x1c8   :  { %2441 = vmatmul.mubr.bf16.vlgmr.msra.gmra.mrb[4].mxu0 %v2008_v30  ;;  %v2076_v30 = vld [vmem:[%s4001_s4] sm:$0x3] }
 0x1c9   :  { %2450 = vmatpush1.bf16.msra.mxu0 %v3622_v29  ;;  %v3685_v29 = vld [vmem:[%s4002_s5 + $0x38] sm:$0xff]  }
 0x1ca   :  { %2451 = vmatprep.subr.bf16.mxu0 %v3627_v32  ;;  %v2081_v32 = vrot.slane %v2076_v30, %v3907_v11 }
 0x1cd   :  { %2452 = vmatpush1.bf16.msra.mxu0 %v3625_v50  ;;  %v2085_v50 = vrot.slane %v2076_v30, %v382_v13  ;;  %v3096_v13 = vld [vmem:[%s4003_s6] ss:$0 sm:$0xff]  ;;  %s3730_s6 = scalar_lea.vmem %s2767_s29, 16 }
 0x1ce   :  { %2453 = vmatprep.subr.bf16.mxu0 %v3630_v33  ;;  %p3731_p2 = scmp.ne.s32.totalorder %s2767_s29, %s3730_s6  ;;  %p3736_p4 = scmp.lt.s32.totalorder %s3734_s30, %s3730_s6 }
 0x1d0   :  { %p3737_p5 = por %p3736_p4, %p3735_p3 }
 0x1d1   :  { %2454 = vmatpush1.bf16.msra.mxu0 %v3628_v34 }
 0x1d2   :  { %2455 = vmatprep.subr.bf16.mxu0 %v3633_v36  ;;  %p3738_p6 = pnand %p3737_p5, %p3731_p2 }
 0x1d5   :  { %2456 = vmatpush1.bf16.msra.mxu0 %v3631_v37 }
 0x1d6   :  { %2457 = vmatprep.subr.bf16.mxu0 %v3636_v39 }
 0x1d9   :  { %2458 = vmatpush1.bf16.msra.mxu0 %v3634_v40 }
 0x1da   :  { %2459 = vmatprep.subr.bf16.mxu0 %v3639_v41 }
 0x1dd   :  { %2460 = vmatpush1.bf16.msra.mxu0 %v3637_v42 }
 0x1de   :  { %2461 = vmatprep.subr.bf16.mxu0 %v3642_v17 }
 0x1e1   :  { %2462 = vmatpush1.bf16.msra.mxu0 %v3640_v43 }
 0x1e2   :  { %2463 = vmatprep.subr.bf16.mxu0 %v3645_v25  ;;  %v3765_v25 = vmov 0.0  }
 0x1e3   :  { %3139 = vmatprep.subr.mxu1 %v3765_v25  ;;  %3141 = vmatprep.mubr.msk.f32.mxu1 %vm3766_vm0, %v3765_v25 }
 0x1e5   :  { %2464 = vmatpush1.bf16.msra.mxu0 %v3643_v45  ;;  %v2671_v45 = vld [vmem:[#allocation2] sm:$0x1] }
 0x1e6   :  { %2465 = vmatprep.subr.bf16.mxu0 %v3648_v46  ;;  %v3767_v46 = vmov 0  }
 0x1e7   :  { %3187 = vset.pattern.permute.xlu0 %v3767_v46 }
 0x1e8   :  { %2674 = vperm.xlu0 %3187, %v2671_v45  }
 0x1e9   :  { %2466 = vmatpush1.bf16.msra.mxu0 %v3646_v31 }
 0x1ea   :  { %2467 = vmatprep.subr.bf16.mxu0 %v3651_v47 }
 0x1ed   :  { %2468 = vmatpush1.bf16.msra.mxu0 %v3649_v19 }
 0x1ee   :  { %2469 = vmatprep.subr.bf16.mxu0 %v3654_v35 }
 0x1f1   :  { %2470 = vmatpush1.bf16.msra.mxu0 %v3652_v48 }
 0x1f2   :  { %2471 = vmatprep.subr.bf16.mxu0 %v3657_v4 }
 0x1f5   :  { %2472 = vmatpush1.bf16.msra.mxu0 %v3655_v49  ;;  %v2670_v49 = vld [vmem:[%s4004_s7] sm:$0x1] }
 0x1f6   :  { %2473 = vmatprep.subr.bf16.mxu0 %v3660_v52 }
 0x1f9   :  { %2474 = vmatpush1.bf16.msra.mxu0 %v3658_v51 }
 0x1fa   :  { %2475 = vmatprep.subr.bf16.mxu0 %v3663_v53 }
 0x1fd   :  { %2476 = vmatpush1.bf16.msra.mxu0 %v3661_v54 }
 0x1fe   :  { %2477 = vmatprep.subr.bf16.mxu0 %v3666_v55 }
 0x201   :  { %2478 = vmatpush1.bf16.msra.mxu0 %v3664_v56 }
 0x202   :  { %2479 = vmatprep.subr.bf16.mxu0 %v3669_v57 }
 0x205   :  { %2480 = vmatpush1.bf16.msra.mxu0 %v3667_v58 }
 0x206   :  { %3115 = vmatprep.subr.bf16.mxu0 %v3670_v59 }
 0x23e   :  { %v1997_v0 = vpop.f32.mrb[4].mxu1 }
 0x23f   :  { %v3148_v1 = vadd.f32 %v1997_v0, %v387_v62  ;;  %v1999_v2 = vpop.f32.mrb[5].mxu1 }
 0x240   :  { %v3149_v3 = vadd.f32 %v1999_v2, %v391_v63  ;;  %v2001_v5 = vpop.f32.mrb[6].mxu1 }
 0x241   :  { %v2006_v6 = vmax.f32 %v3148_v1, 0.0  ;;  %v2002_v7 = vpop.f32.mrb[7].mxu1 }
 0x242   :  { %v2007_v8 = vmax.f32 %v3149_v3, 0.0 }
 0x243   :  { %v2010_v14 = vpack.c.bf16 %v2006_v6, %v2006_v6 }
 0x244   :  { %v2011_v9 = vpack.c.bf16 %v2007_v8, %v2007_v8 }
 0x246   :  { %2481 = vmatprep.mubr.bf16.mxu0 %v2011_v9 }
 0x247   :  { %2482 = vmatmul.mubr.bf16.vlgmr.msra.gmra.mrb[4].mxu0 %v2010_v14 }
 0x248   :  { %3116 = vmatpush3.bf16.msra.mxu0 %v3671_v10 }
 0x249   :  { %3117 = vmatprep.subr.bf16.mxu0 %v3672_v15 }
 0x24c   :  { %3118 = vmatpush3.bf16.msra.mxu0 %v3673_v12 }
 0x24d   :  { %3119 = vmatprep.subr.bf16.mxu0 %v3674_v16 }
 0x250   :  { %3120 = vmatpush3.bf16.msra.mxu0 %v3675_v18 }
 0x251   :  { %3121 = vmatprep.subr.bf16.mxu0 %v3676_v38 }
 0x254   :  { %3122 = vmatpush3.bf16.msra.mxu0 %v3677_v20 }
 0x255   :  { %3123 = vmatprep.subr.bf16.mxu0 %v3678_v21 }
 0x258   :  { %3124 = vmatpush3.bf16.msra.mxu0 %v3679_v22 }
 0x259   :  { %3125 = vmatprep.subr.bf16.mxu0 %v3680_v23 }
 0x25c   :  { %3126 = vmatpush3.bf16.msra.mxu0 %v3681_v24 }
 0x25d   :  { %3127 = vmatprep.subr.bf16.mxu0 %v3682_v26 }
 0x260   :  { %3128 = vmatpush3.bf16.msra.mxu0 %v3683_v27 }
 0x261   :  { %3129 = vmatprep.subr.bf16.mxu0 %v3684_v28 }
 0x264   :  { %3130 = vmatpush3.bf16.msra.mxu0 %v3685_v29 }
 0x267   :  { %v2675_v52 = vpop.permute.xlu0 %2674 }
 0x268   :  { %v2680_v51 = vrot.slane %v2675_v52, %v3907_v11 }
 0x31a   :  { %v2483_v33 = vpop.f32.mrb[4].mxu0 }
 0x31b   :  { %v3150_v34 = vadd.f32 %v2483_v33, %v2081_v32  ;;  %v2485_v36 = vpop.f32.mrb[5].mxu0 }
 0x31c   :  { %v3151_v37 = vadd.f32 %v2485_v36, %v2085_v50  ;;  %v2487_v39 = vpop.f32.mrb[6].mxu0 }
 0x31d   :  { %v2490_v40 = vmax.f32 %v3150_v34, 0.0  ;;  %v2488_v41 = vpop.f32.mrb[7].mxu0 }
 0x31e   :  { %v2491_v42 = vmax.f32 %v3151_v37, 0.0 }
 0x31f   :  { %v2492_v43 = vpack.c.bf16 %v2490_v40, %v2490_v40 }
 0x320   :  { %v2493_v17 = vpack.c.bf16 %v2491_v42, %v2491_v42 }
 0x322   :  { %2661 = vmatprep.mubr.bf16.mxu0 %v2493_v17 }
 0x323   :  { %2662 = vmatmul.mubr.bf16.vlgmr.msra.gmra.mrb[8].mxu0 %v2492_v43 }
 0x3f6   :  { %v3131_v44 = vpop.f32.mrb[8].mxu0 }
 0x3f7   :  { %v3132_v31 = vpop.f32.mrb[9].mxu0 }
 0x3f8   :  { %v3133_v47 = vadd.f32 %v3132_v31, %v3131_v44  ;;  %v3134_v19 = vpop.f32.mrb[10].mxu0 }
 0x3f9   :  { %v3135_v35 = vpop.f32.mrb[11].mxu0 }
 0x3fa   :  { %v2664_v48 = vadd.f32 %v3133_v47, %v3096_v13 }
 0x3fc   :  { %v2669_v4 = vmax.f32 %v2664_v48, 0.0 }
 0x3fe   :  { %3140 = vmatpush3.xpose.msk.msra.mxu1 %vm2681_vm1, %v2669_v4 }
 0x401   :  { %3142 = vmatmul.mubr.msk.f32.vlgmr.msra.gmra.mrb[8].mxu1 %vm2681_vm1, %v2670_v49 }
 0x4d4   :  { %v2754_v53 = vpop.f32.mrb[8].mxu1 }
 0x4d5   :  { %v2755_v54 = vadd.f32 %v2754_v53, %v2680_v51  ;;  %v3143_v55 = vpop.f32.mrb[9].mxu1 }
 0x4d7   :  { %2759 = vst.msk [vmem:[#allocation8] sm:$0x1] %vm2758_vm2, %v2755_v54 }
 0x4d8   :  { %3741 = shalt.err (!%p3738_p6)
}
 0x4d9   :  { %s3742_s11 = scalar_lea.hbm %s4006_s9, 16 }
 0x4da   :  { %p3743_p7 = scmp.ne.s32.totalorder %s4006_s9, %s3742_s11  ;;  %p3746_p8 = scmp.lt.u32.totalorder %s3742_s11, %s4006_s9 }
 0x4dc   :  { %p3748_p9 = pnand %p3746_p8, %p3743_p7 }
 0x4de   :  { %3751 = shalt.err (!%p3748_p9)
}
 0x4df   :  { %2769 = dma.vmem_to_hbm [thread:$0]  %s2767_s29, 16, %s4006_s9, [#allocation5]  }
 0x4e0   :  { %3756 = dma.done.wait [#allocation5], 16  }
 0x4e1   :  { %3757 = vsyncadd [#allocation5], 4294967280 }
 0x4e2   :  { %2773 = vsyncpa [#allocation4], 1 }
 0x4e3   :  { %2774 = vsyncpa [#allocation7], 1 }
 0x4e4   :  { %2775 = vsyncpa [#allocation5], 1 }

</bundles_post_ra>
